<compile_context>
chip_gen: v5e
topology: v5e:2x2
jax: 0.10.0
libtpu: 0.0.40
codegen_flags: <defaults>
</compile_context>

<pallas_src>
import math

import jax
import jax.numpy as jnp
from jax.experimental import pallas as pl
from jax.experimental.pallas import tpu as pltpu

HIDDEN = 32                                   # hidden_size
NUM_LATENTS = 10                              # fixed in ANP.__init__
SMALL_HIDDEN = (HIDDEN + NUM_LATENTS) // 2    # 21
SHOTS = 5   # the reference loss broadcast (log_p (1,N,N) - kl (1,5)) requires N == 5

_HALF_LOG_2PI = 0.5 * math.log(2.0 * math.pi)
_VMEM = pl.BlockSpec(memory_space=pltpu.MemorySpace.VMEM)


def _relu(x):
    return jnp.maximum(x, 0.0)


def _dot(a, b):
    return jnp.dot(a, b, preferred_element_type=jnp.float32)


def _softplus(x):
    return jax.nn.softplus(x)


# ----------------------------- fused ANP kernel ------------------------------

def anp_kernel(x_ref, y_ref, eps_ref,
               # latent encoder (shared between the prior and posterior passes)
               lw1x, lw1y, lb1, lw2, lb2, lw3, lb3, lw4, lb4, lw5, lb5, lwh, lbh,
               # deterministic encoder (value MLP + MHA v_proj / out_proj)
               dw1x, dw1y, db1, dw2, db2, dw3, db3, dw4, db4, dwv, dbv, dwo, dbo,
               # decoder (fc1 pre-split into deter / latent / x row blocks)
               cw1d, cw1l, cw1x, cb1, cw2, cb2, cw3, cb3,
               # outputs
               mu_ref, sigma_ref, loss_ref):
    s = eps_ref.shape[0]                      # shots
    n2 = x_ref.shape[0]                       # 2 * shots (context rows, then target rows)

    x_all = x_ref[...]                        # (2S, 1)  [context_x ; target_x]
    y_all = y_ref[...]                        # (2S, 1)  [context_y ; target_y]
    cx, tx = x_all[:s], x_all[s:]             # (S, 1)
    cy, ty = y_all[:s], y_all[s:]             # (S, 1)

    # ---- LatentEncoder, batched over [context ; target] rows (shared weights:
    # one set of MXU pushes covers both the prior and the posterior pass).
    # Linear(2, H) first layer as a VPU broadcast-FMA (K=2 wastes an MXU fill).
    h = _relu(x_all * lw1x[...] + y_all * lw1y[...] + lb1[...])    # (2S, H)
    h = _relu(_dot(h, lw2[...]) + lb2[...])
    h = _relu(_dot(h, lw3[...]) + lb3[...])
    h = _dot(h, lw4[...]) + lb4[...]                               # (2S, H)

    # torch.mean over the point axis for the context / target halves, done as a
    # single (2, 2S) @ (2S, H) matmul: row 0 -> prior feat, row 1 -> posterior.
    rr = jax.lax.broadcasted_iota(jnp.int32, (2, n2), 0)
    cc = jax.lax.broadcasted_iota(jnp.int32, (2, n2), 1)
    seg = ((rr == 0) == (cc < s)).astype(jnp.float32) * (1.0 / s)  # (2, 2S)
    m = _dot(seg, h)                                               # (2, H)

    h5 = _relu(_dot(m, lw5[...]) + lb5[...])                       # (2, SMALL_HIDDEN)
    # mu / log_sigma heads fused into a single matmul ([wmu | wsg]).
    heads = _dot(h5, lwh[...]) + lbh[...]                          # (2, 2*NUM_LATENTS)
    mu2 = heads[:, :NUM_LATENTS]
    sg2 = 0.1 + 0.9 * _softplus(heads[:, NUM_LATENTS:])
    prior_mu, post_mu = mu2[0:1], mu2[1:2]                         # (1, NUM_LATENTS)
    prior_sg, post_sg = sg2[0:1], sg2[1:2]

    # ---- DeterministicEncoder.  The attention softmax runs over a single key
    # position, so its weight is exactly 1 and the MHA output reduces to
    # out_proj(v_proj(value)); q/k (and context/target projections) are dead.
    v = _relu(cx * dw1x[...] + cy * dw1y[...] + db1[...])          # (S, H)
    v = _relu(_dot(v, dw2[...]) + db2[...])
    v = _relu(_dot(v, dw3[...]) + db3[...])
    v = _dot(v, dw4[...]) + db4[...]                               # (S, H) attention "value"
    deter = _dot(_dot(v, dwv[...]) + dbv[...], dwo[...]) + dbo[...]  # (S, H)

    # ---- latent sample: posterior.sample((1, shots)).squeeze(2)
    latent_rep = post_mu + post_sg * eps_ref[...]                  # (S, NUM_LATENTS)

    # ---- Decoder on concat([deter, latent, target_x], -1) without building the
    # concat: fc1's weight is pre-split into its three row blocks.
    d = _relu(_dot(deter, cw1d[...]) + _dot(latent_rep, cw1l[...])
              + tx * cw1x[...] + cb1[...])                         # (S, H)
    d = _relu(_dot(d, cw2[...]) + cb2[...])
    o = _dot(d, cw3[...]) + cb3[...]                               # (S, 2)
    mu_col = o[:, 0:1]                                             # (S, 1)
    sg_col = 0.1 + 0.9 * _softplus(o[:, 1:2])                      # (S, 1)

    # column -> row (mu/sigma are emitted as (1, shots)) via diag-select +
    # sublane reduction (avoids relying on a tiny transpose relayout).
    ii = jax.lax.broadcasted_iota(jnp.int32, (s, s), 0)
    jj = jax.lax.broadcasted_iota(jnp.int32, (s, s), 1)
    eye = (ii == jj).astype(jnp.float32)                           # (S, S)
    mu_row = jnp.sum(eye * mu_col, axis=0, keepdims=True)          # (1, S)
    sg_row = jnp.sum(eye * sg_col, axis=0, keepdims=True)          # (1, S)

    # ---- Normal(mu, sigma).log_prob(target_y[None]): the reference broadcasts
    # (1,S,1) values against (1,S) params -> (S, S) cross matrix.
    z = (ty - mu_row) / sg_row                                     # (S, S)
    log_p = -jnp.log(sg_row) - _HALF_LOG_2PI - 0.5 * z * z         # (S, S)

    # ---- ANP.kl_div (reference quirk kept: stddevs are fed into the "var" slots).
    kl = ((jnp.exp(post_sg) + (post_mu - prior_mu) ** 2) / jnp.exp(prior_sg)
          - 1.0 + (prior_sg - post_sg))                            # (1, NUM_LATENTS)
    kl_sum = jnp.sum(kl, keepdims=True)                            # (1, 1)

    # loss = -mean(log_p - tile(kl_sum, (1,5))) == kl_sum - mean(log_p), since
    # every entry of the tiled kl equals kl_sum (the reference needs shots==5).
    mean_log_p = jnp.sum(log_p, keepdims=True) * (1.0 / (s * s))   # (1, 1)

    mu_ref[...] = mu_row
    sigma_ref[...] = sg_row
    loss_ref[...] = kl_sum - mean_log_p


# ------------------------------ host-side wrapper -----------------------------

def anp_forward(params, context_x, context_y, target_x, target_y, sample_key):
    shots = context_x.shape[0]
    # Stack context rows on top of target rows so the latent encoder runs both
    # passes through one set of matmuls; the kernel slices the halves back out.
    x_all = jnp.concatenate([context_x, target_x], axis=0)          # (2S, 1)
    y_all = jnp.concatenate([context_y, target_y], axis=0)          # (2S, 1)
    eps = jax.random.normal(sample_key, (shots, NUM_LATENTS), jnp.float32)
    # TODO(synk): eps could be drawn in-kernel via pltpu.prng_seed/prng_random_bits
    # to drop this one remaining host-graph op; kept host-side for portability.

    args = [x_all, y_all, eps, *params]
    mu, sigma, loss = pl.pallas_call(
        anp_kernel,
        out_shape=(jax.ShapeDtypeStruct((1, shots), jnp.float32),
                   jax.ShapeDtypeStruct((1, shots), jnp.float32),
                   jax.ShapeDtypeStruct((1, 1), jnp.float32)),
        in_specs=[_VMEM] * len(args),
        out_specs=(_VMEM, _VMEM, _VMEM),
    )(*args)
    return mu, sigma, loss[0, 0]


# ------------------------------ parameter init -------------------------------

def init_linear(key, fan_in, fan_out):
    kw, kb = jax.random.split(key)
    bound = 1.0 / math.sqrt(fan_in)
    w = jax.random.uniform(kw, (fan_in, fan_out), jnp.float32, -bound, bound)
    b = jax.random.uniform(kb, (1, fan_out), jnp.float32, -bound, bound)
    return w, b


def init_params(key):
    keys = iter(jax.random.split(key, 16))

    # latent encoder
    lw1, lb1 = init_linear(next(keys), 2, HIDDEN)
    lw2, lb2 = init_linear(next(keys), HIDDEN, HIDDEN)
    lw3, lb3 = init_linear(next(keys), HIDDEN, HIDDEN)
    lw4, lb4 = init_linear(next(keys), HIDDEN, HIDDEN)
    lw5, lb5 = init_linear(next(keys), HIDDEN, SMALL_HIDDEN)
    wmu, bmu = init_linear(next(keys), SMALL_HIDDEN, NUM_LATENTS)
    wsg, bsg = init_linear(next(keys), SMALL_HIDDEN, NUM_LATENTS)
    lat = [lw1[0:1], lw1[1:2], lb1, lw2, lb2, lw3, lb3, lw4, lb4, lw5, lb5,
           jnp.concatenate([wmu, wsg], axis=1),       # fused mu | log_sigma head
           jnp.concatenate([bmu, bsg], axis=1)]

    # deterministic encoder: only the value MLP and the MHA v_proj/out_proj can
    # affect the output (softmax over a length-1 key axis is exactly 1), so the
    # q/k in_proj and the context/target projections are omitted entirely.
    dw1, db1 = init_linear(next(keys), 2, HIDDEN)
    dw2, db2 = init_linear(next(keys), HIDDEN, HIDDEN)
    dw3, db3 = init_linear(next(keys), HIDDEN, HIDDEN)
    dw4, db4 = init_linear(next(keys), HIDDEN, HIDDEN)
    dwv, dbv = init_linear(next(keys), HIDDEN, HIDDEN)
    dwo, dbo = init_linear(next(keys), HIDDEN, HIDDEN)
    det = [dw1[0:1], dw1[1:2], db1, dw2, db2, dw3, db3, dw4, db4,
           dwv, dbv, dwo, dbo]

    # decoder: fc1 (43 -> H) pre-split into [deter(32) | latent(10) | x(1)] rows
    cw1, cb1 = init_linear(next(keys), HIDDEN + NUM_LATENTS + 1, HIDDEN)
    cw2, cb2 = init_linear(next(keys), HIDDEN, HIDDEN)
    cw3, cb3 = init_linear(next(keys), HIDDEN, 2)
    dec = [cw1[:HIDDEN], cw1[HIDDEN:HIDDEN + NUM_LATENTS],
           cw1[HIDDEN + NUM_LATENTS:], cb1, cw2, cb2, cw3, cb3]

    return lat + det + dec


# ------------------------------ main ------------------------------

if __name__ == "__main__":
    root = jax.random.PRNGKey(0)
    kp, kcx, kcy, ktx, kty, ksample = jax.random.split(root, 6)

    params = init_params(kp)

    context_x = jax.random.normal(kcx, (SHOTS, 1), jnp.float32)
    context_y = jax.random.normal(kcy, (SHOTS, 1), jnp.float32)
    target_x = jax.random.normal(ktx, (SHOTS, 1), jnp.float32)
    target_y = jax.random.normal(kty, (SHOTS, 1), jnp.float32)

    mu, sigma, loss = jax.jit(anp_forward)(params, context_x, context_y,
                                           target_x, target_y, ksample)
    jax.block_until_ready((mu, sigma, loss))

    assert mu.shape == (1, SHOTS) and sigma.shape == (1, SHOTS) and loss.shape == ()
    assert bool(jnp.all(sigma >= 0.1)) and bool(jnp.isfinite(loss))
    print("KERNEL_OK")
</pallas_src>

<mosaic_0001>
module attributes {stable_mosaic.version = 11 : i64} {
  func.func @anp_kernel(%arg0: memref<10x1xf32, #tpu.memory_space<vmem>>, %arg1: memref<10x1xf32, #tpu.memory_space<vmem>>, %arg2: memref<5x10xf32, #tpu.memory_space<vmem>>, %arg3: memref<1x32xf32, #tpu.memory_space<vmem>>, %arg4: memref<1x32xf32, #tpu.memory_space<vmem>>, %arg5: memref<1x32xf32, #tpu.memory_space<vmem>>, %arg6: memref<32x32xf32, #tpu.memory_space<vmem>>, %arg7: memref<1x32xf32, #tpu.memory_space<vmem>>, %arg8: memref<32x32xf32, #tpu.memory_space<vmem>>, %arg9: memref<1x32xf32, #tpu.memory_space<vmem>>, %arg10: memref<32x32xf32, #tpu.memory_space<vmem>>, %arg11: memref<1x32xf32, #tpu.memory_space<vmem>>, %arg12: memref<32x21xf32, #tpu.memory_space<vmem>>, %arg13: memref<1x21xf32, #tpu.memory_space<vmem>>, %arg14: memref<21x20xf32, #tpu.memory_space<vmem>>, %arg15: memref<1x20xf32, #tpu.memory_space<vmem>>, %arg16: memref<1x32xf32, #tpu.memory_space<vmem>>, %arg17: memref<1x32xf32, #tpu.memory_space<vmem>>, %arg18: memref<1x32xf32, #tpu.memory_space<vmem>>, %arg19: memref<32x32xf32, #tpu.memory_space<vmem>>, %arg20: memref<1x32xf32, #tpu.memory_space<vmem>>, %arg21: memref<32x32xf32, #tpu.memory_space<vmem>>, %arg22: memref<1x32xf32, #tpu.memory_space<vmem>>, %arg23: memref<32x32xf32, #tpu.memory_space<vmem>>, %arg24: memref<1x32xf32, #tpu.memory_space<vmem>>, %arg25: memref<32x32xf32, #tpu.memory_space<vmem>>, %arg26: memref<1x32xf32, #tpu.memory_space<vmem>>, %arg27: memref<32x32xf32, #tpu.memory_space<vmem>>, %arg28: memref<1x32xf32, #tpu.memory_space<vmem>>, %arg29: memref<32x32xf32, #tpu.memory_space<vmem>>, %arg30: memref<10x32xf32, #tpu.memory_space<vmem>>, %arg31: memref<1x32xf32, #tpu.memory_space<vmem>>, %arg32: memref<1x32xf32, #tpu.memory_space<vmem>>, %arg33: memref<32x32xf32, #tpu.memory_space<vmem>>, %arg34: memref<1x32xf32, #tpu.memory_space<vmem>>, %arg35: memref<32x2xf32, #tpu.memory_space<vmem>>, %arg36: memref<1x2xf32, #tpu.memory_space<vmem>>, %arg37: memref<1x5xf32, #tpu.memory_space<vmem>>, %arg38: memref<1x5xf32, #tpu.memory_space<vmem>>, %arg39: memref<1x1xf32, #tpu.memory_space<vmem>>) attributes {dimension_semantics = [], scalar_prefetch = 0 : i64, scratch_operands = 0 : i64, tpu.core_type = #tpu.core_type<tc>} {
    %c0 = arith.constant 0 : index
    %c0_0 = arith.constant 0 : index
    %0 = vector.load %arg0[%c0, %c0_0] : memref<10x1xf32, #tpu.memory_space<vmem>>, vector<10x1xf32>
    %c0_1 = arith.constant 0 : index
    %c0_2 = arith.constant 0 : index
    %1 = vector.load %arg1[%c0_1, %c0_2] : memref<10x1xf32, #tpu.memory_space<vmem>>, vector<10x1xf32>
    %2 = vector.extract_strided_slice %0 {offsets = [0, 0], sizes = [5, 1], strides = [1, 1]} : vector<10x1xf32> to vector<5x1xf32>
    %3 = vector.extract_strided_slice %0 {offsets = [5, 0], sizes = [5, 1], strides = [1, 1]} : vector<10x1xf32> to vector<5x1xf32>
    %4 = vector.extract_strided_slice %1 {offsets = [0, 0], sizes = [5, 1], strides = [1, 1]} : vector<10x1xf32> to vector<5x1xf32>
    %5 = vector.extract_strided_slice %1 {offsets = [5, 0], sizes = [5, 1], strides = [1, 1]} : vector<10x1xf32> to vector<5x1xf32>
    %c0_3 = arith.constant 0 : index
    %c0_4 = arith.constant 0 : index
    %6 = vector.load %arg3[%c0_3, %c0_4] : memref<1x32xf32, #tpu.memory_space<vmem>>, vector<1x32xf32>
    %7 = vector.broadcast %0 : vector<10x1xf32> to vector<10x32xf32>
    %8 = vector.broadcast %6 : vector<1x32xf32> to vector<10x32xf32>
    %9 = arith.mulf %7, %8 : vector<10x32xf32>
    %c0_5 = arith.constant 0 : index
    %c0_6 = arith.constant 0 : index
    %10 = vector.load %arg4[%c0_5, %c0_6] : memref<1x32xf32, #tpu.memory_space<vmem>>, vector<1x32xf32>
    %11 = vector.broadcast %1 : vector<10x1xf32> to vector<10x32xf32>
    %12 = vector.broadcast %10 : vector<1x32xf32> to vector<10x32xf32>
    %13 = arith.mulf %11, %12 : vector<10x32xf32>
    %14 = arith.addf %9, %13 : vector<10x32xf32>
    %c0_7 = arith.constant 0 : index
    %c0_8 = arith.constant 0 : index
    %15 = vector.load %arg5[%c0_7, %c0_8] : memref<1x32xf32, #tpu.memory_space<vmem>>, vector<1x32xf32>
    %16 = vector.broadcast %15 : vector<1x32xf32> to vector<10x32xf32>
    %17 = arith.addf %14, %16 : vector<10x32xf32>
    %cst = arith.constant 0.000000e+00 : f32
    %18 = vector.broadcast %cst : f32 to vector<10x32xf32>
    %19 = arith.maximumf %17, %18 : vector<10x32xf32>
    %c0_9 = arith.constant 0 : index
    %c0_10 = arith.constant 0 : index
    %20 = vector.load %arg6[%c0_9, %c0_10] : memref<32x32xf32, #tpu.memory_space<vmem>>, vector<32x32xf32>
    %cst_11 = arith.constant dense<0.000000e+00> : vector<10x32xf32>
    %21 = tpu.matmul %19, %20, %cst_11 {dimension_numbers = #tpu.dot_dimension_numbers<[1], [0], [0], [1], [0, 0, 1, 1], [], []>} : vector<10x32xf32>, vector<32x32xf32>, vector<10x32xf32> -> vector<10x32xf32>
    %c0_12 = arith.constant 0 : index
    %c0_13 = arith.constant 0 : index
    %22 = vector.load %arg7[%c0_12, %c0_13] : memref<1x32xf32, #tpu.memory_space<vmem>>, vector<1x32xf32>
    %23 = vector.broadcast %22 : vector<1x32xf32> to vector<10x32xf32>
    %24 = arith.addf %21, %23 : vector<10x32xf32>
    %cst_14 = arith.constant 0.000000e+00 : f32
    %25 = vector.broadcast %cst_14 : f32 to vector<10x32xf32>
    %26 = arith.maximumf %24, %25 : vector<10x32xf32>
    %c0_15 = arith.constant 0 : index
    %c0_16 = arith.constant 0 : index
    %27 = vector.load %arg8[%c0_15, %c0_16] : memref<32x32xf32, #tpu.memory_space<vmem>>, vector<32x32xf32>
    %cst_17 = arith.constant dense<0.000000e+00> : vector<10x32xf32>
    %28 = tpu.matmul %26, %27, %cst_17 {dimension_numbers = #tpu.dot_dimension_numbers<[1], [0], [0], [1], [0, 0, 1, 1], [], []>} : vector<10x32xf32>, vector<32x32xf32>, vector<10x32xf32> -> vector<10x32xf32>
    %c0_18 = arith.constant 0 : index
    %c0_19 = arith.constant 0 : index
    %29 = vector.load %arg9[%c0_18, %c0_19] : memref<1x32xf32, #tpu.memory_space<vmem>>, vector<1x32xf32>
    %30 = vector.broadcast %29 : vector<1x32xf32> to vector<10x32xf32>
    %31 = arith.addf %28, %30 : vector<10x32xf32>
    %cst_20 = arith.constant 0.000000e+00 : f32
    %32 = vector.broadcast %cst_20 : f32 to vector<10x32xf32>
    %33 = arith.maximumf %31, %32 : vector<10x32xf32>
    %c0_21 = arith.constant 0 : index
    %c0_22 = arith.constant 0 : index
    %34 = vector.load %arg10[%c0_21, %c0_22] : memref<32x32xf32, #tpu.memory_space<vmem>>, vector<32x32xf32>
    %cst_23 = arith.constant dense<0.000000e+00> : vector<10x32xf32>
    %35 = tpu.matmul %33, %34, %cst_23 {dimension_numbers = #tpu.dot_dimension_numbers<[1], [0], [0], [1], [0, 0, 1, 1], [], []>} : vector<10x32xf32>, vector<32x32xf32>, vector<10x32xf32> -> vector<10x32xf32>
    %c0_24 = arith.constant 0 : index
    %c0_25 = arith.constant 0 : index
    %36 = vector.load %arg11[%c0_24, %c0_25] : memref<1x32xf32, #tpu.memory_space<vmem>>, vector<1x32xf32>
    %37 = vector.broadcast %36 : vector<1x32xf32> to vector<10x32xf32>
    %38 = arith.addf %35, %37 : vector<10x32xf32>
    %39 = tpu.iota {dimensions = array<i32: 0>} : vector<2x10xi32>
    %40 = tpu.iota {dimensions = array<i32: 1>} : vector<2x10xi32>
    %c0_i32 = arith.constant 0 : i32
    %41 = vector.broadcast %c0_i32 : i32 to vector<2x10xi32>
    %42 = arith.cmpi eq, %39, %41 : vector<2x10xi32>
    %c5_i32 = arith.constant 5 : i32
    %43 = vector.broadcast %c5_i32 : i32 to vector<2x10xi32>
    %44 = arith.cmpi slt, %40, %43 : vector<2x10xi32>
    %45 = arith.xori %42, %44 : vector<2x10xi1>
    %cst_26 = arith.constant dense<true> : vector<2x10xi1>
    %46 = arith.xori %45, %cst_26 : vector<2x10xi1>
    %47 = arith.extui %46 : vector<2x10xi1> to vector<2x10xi32>
    %48 = arith.sitofp %47 : vector<2x10xi32> to vector<2x10xf32>
    %cst_27 = arith.constant 2.000000e-01 : f32
    %49 = vector.broadcast %cst_27 : f32 to vector<2x10xf32>
    %50 = arith.mulf %48, %49 : vector<2x10xf32>
    %cst_28 = arith.constant dense<0.000000e+00> : vector<2x32xf32>
    %51 = tpu.matmul %50, %38, %cst_28 {dimension_numbers = #tpu.dot_dimension_numbers<[1], [0], [0], [1], [0, 0, 1, 1], [], []>} : vector<2x10xf32>, vector<10x32xf32>, vector<2x32xf32> -> vector<2x32xf32>
    %c0_29 = arith.constant 0 : index
    %c0_30 = arith.constant 0 : index
    %52 = vector.load %arg12[%c0_29, %c0_30] : memref<32x21xf32, #tpu.memory_space<vmem>>, vector<32x21xf32>
    %cst_31 = arith.constant dense<0.000000e+00> : vector<2x21xf32>
    %53 = tpu.matmul %51, %52, %cst_31 {dimension_numbers = #tpu.dot_dimension_numbers<[1], [0], [0], [1], [0, 0, 1, 1], [], []>} : vector<2x32xf32>, vector<32x21xf32>, vector<2x21xf32> -> vector<2x21xf32>
    %c0_32 = arith.constant 0 : index
    %c0_33 = arith.constant 0 : index
    %54 = vector.load %arg13[%c0_32, %c0_33] : memref<1x21xf32, #tpu.memory_space<vmem>>, vector<1x21xf32>
    %55 = vector.broadcast %54 : vector<1x21xf32> to vector<2x21xf32>
    %56 = arith.addf %53, %55 : vector<2x21xf32>
    %cst_34 = arith.constant 0.000000e+00 : f32
    %57 = vector.broadcast %cst_34 : f32 to vector<2x21xf32>
    %58 = arith.maximumf %56, %57 : vector<2x21xf32>
    %c0_35 = arith.constant 0 : index
    %c0_36 = arith.constant 0 : index
    %59 = vector.load %arg14[%c0_35, %c0_36] : memref<21x20xf32, #tpu.memory_space<vmem>>, vector<21x20xf32>
    %cst_37 = arith.constant dense<0.000000e+00> : vector<2x20xf32>
    %60 = tpu.matmul %58, %59, %cst_37 {dimension_numbers = #tpu.dot_dimension_numbers<[1], [0], [0], [1], [0, 0, 1, 1], [], []>} : vector<2x21xf32>, vector<21x20xf32>, vector<2x20xf32> -> vector<2x20xf32>
    %c0_38 = arith.constant 0 : index
    %c0_39 = arith.constant 0 : index
    %61 = vector.load %arg15[%c0_38, %c0_39] : memref<1x20xf32, #tpu.memory_space<vmem>>, vector<1x20xf32>
    %62 = vector.broadcast %61 : vector<1x20xf32> to vector<2x20xf32>
    %63 = arith.addf %60, %62 : vector<2x20xf32>
    %64 = vector.extract_strided_slice %63 {offsets = [0, 0], sizes = [2, 10], strides = [1, 1]} : vector<2x20xf32> to vector<2x10xf32>
    %65 = vector.extract_strided_slice %63 {offsets = [0, 10], sizes = [2, 10], strides = [1, 1]} : vector<2x20xf32> to vector<2x10xf32>
    %cst_40 = arith.constant 0.000000e+00 : f32
    %66 = vector.broadcast %cst_40 : f32 to vector<2x10xf32>
    %67 = arith.maximumf %65, %66 : vector<2x10xf32>
    %68 = vector.broadcast %cst_40 : f32 to vector<2x10xf32>
    %69 = arith.subf %65, %68 : vector<2x10xf32>
    %70 = arith.cmpf one, %69, %69 : vector<2x10xf32>
    %71 = vector.broadcast %cst_40 : f32 to vector<2x10xf32>
    %72 = arith.addf %65, %71 : vector<2x10xf32>
    %73 = math.absf %69 : vector<2x10xf32>
    %cst_41 = arith.constant 0.000000e+00 : f32
    %74 = vector.broadcast %cst_41 : f32 to vector<2x10xf32>
    %75 = arith.subf %74, %73 : vector<2x10xf32>
    %76 = math.exp %75 : vector<2x10xf32>
    %77 = math.log1p %76 : vector<2x10xf32>
    %78 = arith.addf %67, %77 : vector<2x10xf32>
    %79 = arith.select %70, %72, %78 : vector<2x10xi1>, vector<2x10xf32>
    %cst_42 = arith.constant 0.899999976 : f32
    %80 = vector.broadcast %cst_42 : f32 to vector<2x10xf32>
    %81 = arith.mulf %80, %79 : vector<2x10xf32>
    %cst_43 = arith.constant 1.000000e-01 : f32
    %82 = vector.broadcast %cst_43 : f32 to vector<2x10xf32>
    %83 = arith.addf %82, %81 : vector<2x10xf32>
    %84 = vector.extract_strided_slice %64 {offsets = [0, 0], sizes = [1, 10], strides = [1, 1]} : vector<2x10xf32> to vector<1x10xf32>
    %85 = vector.extract_strided_slice %64 {offsets = [1, 0], sizes = [1, 10], strides = [1, 1]} : vector<2x10xf32> to vector<1x10xf32>
    %86 = vector.extract_strided_slice %83 {offsets = [0, 0], sizes = [1, 10], strides = [1, 1]} : vector<2x10xf32> to vector<1x10xf32>
    %87 = vector.extract_strided_slice %83 {offsets = [1, 0], sizes = [1, 10], strides = [1, 1]} : vector<2x10xf32> to vector<1x10xf32>
    %c0_44 = arith.constant 0 : index
    %c0_45 = arith.constant 0 : index
    %88 = vector.load %arg16[%c0_44, %c0_45] : memref<1x32xf32, #tpu.memory_space<vmem>>, vector<1x32xf32>
    %89 = vector.broadcast %2 : vector<5x1xf32> to vector<5x32xf32>
    %90 = vector.broadcast %88 : vector<1x32xf32> to vector<5x32xf32>
    %91 = arith.mulf %89, %90 : vector<5x32xf32>
    %c0_46 = arith.constant 0 : index
    %c0_47 = arith.constant 0 : index
    %92 = vector.load %arg17[%c0_46, %c0_47] : memref<1x32xf32, #tpu.memory_space<vmem>>, vector<1x32xf32>
    %93 = vector.broadcast %4 : vector<5x1xf32> to vector<5x32xf32>
    %94 = vector.broadcast %92 : vector<1x32xf32> to vector<5x32xf32>
    %95 = arith.mulf %93, %94 : vector<5x32xf32>
    %96 = arith.addf %91, %95 : vector<5x32xf32>
    %c0_48 = arith.constant 0 : index
    %c0_49 = arith.constant 0 : index
    %97 = vector.load %arg18[%c0_48, %c0_49] : memref<1x32xf32, #tpu.memory_space<vmem>>, vector<1x32xf32>
    %98 = vector.broadcast %97 : vector<1x32xf32> to vector<5x32xf32>
    %99 = arith.addf %96, %98 : vector<5x32xf32>
    %cst_50 = arith.constant 0.000000e+00 : f32
    %100 = vector.broadcast %cst_50 : f32 to vector<5x32xf32>
    %101 = arith.maximumf %99, %100 : vector<5x32xf32>
    %c0_51 = arith.constant 0 : index
    %c0_52 = arith.constant 0 : index
    %102 = vector.load %arg19[%c0_51, %c0_52] : memref<32x32xf32, #tpu.memory_space<vmem>>, vector<32x32xf32>
    %cst_53 = arith.constant dense<0.000000e+00> : vector<5x32xf32>
    %103 = tpu.matmul %101, %102, %cst_53 {dimension_numbers = #tpu.dot_dimension_numbers<[1], [0], [0], [1], [0, 0, 1, 1], [], []>} : vector<5x32xf32>, vector<32x32xf32>, vector<5x32xf32> -> vector<5x32xf32>
    %c0_54 = arith.constant 0 : index
    %c0_55 = arith.constant 0 : index
    %104 = vector.load %arg20[%c0_54, %c0_55] : memref<1x32xf32, #tpu.memory_space<vmem>>, vector<1x32xf32>
    %105 = vector.broadcast %104 : vector<1x32xf32> to vector<5x32xf32>
    %106 = arith.addf %103, %105 : vector<5x32xf32>
    %cst_56 = arith.constant 0.000000e+00 : f32
    %107 = vector.broadcast %cst_56 : f32 to vector<5x32xf32>
    %108 = arith.maximumf %106, %107 : vector<5x32xf32>
    %c0_57 = arith.constant 0 : index
    %c0_58 = arith.constant 0 : index
    %109 = vector.load %arg21[%c0_57, %c0_58] : memref<32x32xf32, #tpu.memory_space<vmem>>, vector<32x32xf32>
    %cst_59 = arith.constant dense<0.000000e+00> : vector<5x32xf32>
    %110 = tpu.matmul %108, %109, %cst_59 {dimension_numbers = #tpu.dot_dimension_numbers<[1], [0], [0], [1], [0, 0, 1, 1], [], []>} : vector<5x32xf32>, vector<32x32xf32>, vector<5x32xf32> -> vector<5x32xf32>
    %c0_60 = arith.constant 0 : index
    %c0_61 = arith.constant 0 : index
    %111 = vector.load %arg22[%c0_60, %c0_61] : memref<1x32xf32, #tpu.memory_space<vmem>>, vector<1x32xf32>
    %112 = vector.broadcast %111 : vector<1x32xf32> to vector<5x32xf32>
    %113 = arith.addf %110, %112 : vector<5x32xf32>
    %cst_62 = arith.constant 0.000000e+00 : f32
    %114 = vector.broadcast %cst_62 : f32 to vector<5x32xf32>
    %115 = arith.maximumf %113, %114 : vector<5x32xf32>
    %c0_63 = arith.constant 0 : index
    %c0_64 = arith.constant 0 : index
    %116 = vector.load %arg23[%c0_63, %c0_64] : memref<32x32xf32, #tpu.memory_space<vmem>>, vector<32x32xf32>
    %cst_65 = arith.constant dense<0.000000e+00> : vector<5x32xf32>
    %117 = tpu.matmul %115, %116, %cst_65 {dimension_numbers = #tpu.dot_dimension_numbers<[1], [0], [0], [1], [0, 0, 1, 1], [], []>} : vector<5x32xf32>, vector<32x32xf32>, vector<5x32xf32> -> vector<5x32xf32>
    %c0_66 = arith.constant 0 : index
    %c0_67 = arith.constant 0 : index
    %118 = vector.load %arg24[%c0_66, %c0_67] : memref<1x32xf32, #tpu.memory_space<vmem>>, vector<1x32xf32>
    %119 = vector.broadcast %118 : vector<1x32xf32> to vector<5x32xf32>
    %120 = arith.addf %117, %119 : vector<5x32xf32>
    %c0_68 = arith.constant 0 : index
    %c0_69 = arith.constant 0 : index
    %121 = vector.load %arg25[%c0_68, %c0_69] : memref<32x32xf32, #tpu.memory_space<vmem>>, vector<32x32xf32>
    %cst_70 = arith.constant dense<0.000000e+00> : vector<5x32xf32>
    %122 = tpu.matmul %120, %121, %cst_70 {dimension_numbers = #tpu.dot_dimension_numbers<[1], [0], [0], [1], [0, 0, 1, 1], [], []>} : vector<5x32xf32>, vector<32x32xf32>, vector<5x32xf32> -> vector<5x32xf32>
    %c0_71 = arith.constant 0 : index
    %c0_72 = arith.constant 0 : index
    %123 = vector.load %arg26[%c0_71, %c0_72] : memref<1x32xf32, #tpu.memory_space<vmem>>, vector<1x32xf32>
    %124 = vector.broadcast %123 : vector<1x32xf32> to vector<5x32xf32>
    %125 = arith.addf %122, %124 : vector<5x32xf32>
    %c0_73 = arith.constant 0 : index
    %c0_74 = arith.constant 0 : index
    %126 = vector.load %arg27[%c0_73, %c0_74] : memref<32x32xf32, #tpu.memory_space<vmem>>, vector<32x32xf32>
    %cst_75 = arith.constant dense<0.000000e+00> : vector<5x32xf32>
    %127 = tpu.matmul %125, %126, %cst_75 {dimension_numbers = #tpu.dot_dimension_numbers<[1], [0], [0], [1], [0, 0, 1, 1], [], []>} : vector<5x32xf32>, vector<32x32xf32>, vector<5x32xf32> -> vector<5x32xf32>
    %c0_76 = arith.constant 0 : index
    %c0_77 = arith.constant 0 : index
    %128 = vector.load %arg28[%c0_76, %c0_77] : memref<1x32xf32, #tpu.memory_space<vmem>>, vector<1x32xf32>
    %129 = vector.broadcast %128 : vector<1x32xf32> to vector<5x32xf32>
    %130 = arith.addf %127, %129 : vector<5x32xf32>
    %c0_78 = arith.constant 0 : index
    %c0_79 = arith.constant 0 : index
    %131 = vector.load %arg2[%c0_78, %c0_79] : memref<5x10xf32, #tpu.memory_space<vmem>>, vector<5x10xf32>
    %132 = vector.broadcast %87 : vector<1x10xf32> to vector<5x10xf32>
    %133 = arith.mulf %132, %131 : vector<5x10xf32>
    %134 = vector.broadcast %85 : vector<1x10xf32> to vector<5x10xf32>
    %135 = arith.addf %134, %133 : vector<5x10xf32>
    %c0_80 = arith.constant 0 : index
    %c0_81 = arith.constant 0 : index
    %136 = vector.load %arg29[%c0_80, %c0_81] : memref<32x32xf32, #tpu.memory_space<vmem>>, vector<32x32xf32>
    %cst_82 = arith.constant dense<0.000000e+00> : vector<5x32xf32>
    %137 = tpu.matmul %130, %136, %cst_82 {dimension_numbers = #tpu.dot_dimension_numbers<[1], [0], [0], [1], [0, 0, 1, 1], [], []>} : vector<5x32xf32>, vector<32x32xf32>, vector<5x32xf32> -> vector<5x32xf32>
    %c0_83 = arith.constant 0 : index
    %c0_84 = arith.constant 0 : index
    %138 = vector.load %arg30[%c0_83, %c0_84] : memref<10x32xf32, #tpu.memory_space<vmem>>, vector<10x32xf32>
    %cst_85 = arith.constant dense<0.000000e+00> : vector<5x32xf32>
    %139 = tpu.matmul %135, %138, %cst_85 {dimension_numbers = #tpu.dot_dimension_numbers<[1], [0], [0], [1], [0, 0, 1, 1], [], []>} : vector<5x10xf32>, vector<10x32xf32>, vector<5x32xf32> -> vector<5x32xf32>
    %140 = arith.addf %137, %139 : vector<5x32xf32>
    %c0_86 = arith.constant 0 : index
    %c0_87 = arith.constant 0 : index
    %141 = vector.load %arg31[%c0_86, %c0_87] : memref<1x32xf32, #tpu.memory_space<vmem>>, vector<1x32xf32>
    %142 = vector.broadcast %3 : vector<5x1xf32> to vector<5x32xf32>
    %143 = vector.broadcast %141 : vector<1x32xf32> to vector<5x32xf32>
    %144 = arith.mulf %142, %143 : vector<5x32xf32>
    %145 = arith.addf %140, %144 : vector<5x32xf32>
    %c0_88 = arith.constant 0 : index
    %c0_89 = arith.constant 0 : index
    %146 = vector.load %arg32[%c0_88, %c0_89] : memref<1x32xf32, #tpu.memory_space<vmem>>, vector<1x32xf32>
    %147 = vector.broadcast %146 : vector<1x32xf32> to vector<5x32xf32>
    %148 = arith.addf %145, %147 : vector<5x32xf32>
    %cst_90 = arith.constant 0.000000e+00 : f32
    %149 = vector.broadcast %cst_90 : f32 to vector<5x32xf32>
    %150 = arith.maximumf %148, %149 : vector<5x32xf32>
    %c0_91 = arith.constant 0 : index
    %c0_92 = arith.constant 0 : index
    %151 = vector.load %arg33[%c0_91, %c0_92] : memref<32x32xf32, #tpu.memory_space<vmem>>, vector<32x32xf32>
    %cst_93 = arith.constant dense<0.000000e+00> : vector<5x32xf32>
    %152 = tpu.matmul %150, %151, %cst_93 {dimension_numbers = #tpu.dot_dimension_numbers<[1], [0], [0], [1], [0, 0, 1, 1], [], []>} : vector<5x32xf32>, vector<32x32xf32>, vector<5x32xf32> -> vector<5x32xf32>
    %c0_94 = arith.constant 0 : index
    %c0_95 = arith.constant 0 : index
    %153 = vector.load %arg34[%c0_94, %c0_95] : memref<1x32xf32, #tpu.memory_space<vmem>>, vector<1x32xf32>
    %154 = vector.broadcast %153 : vector<1x32xf32> to vector<5x32xf32>
    %155 = arith.addf %152, %154 : vector<5x32xf32>
    %cst_96 = arith.constant 0.000000e+00 : f32
    %156 = vector.broadcast %cst_96 : f32 to vector<5x32xf32>
    %157 = arith.maximumf %155, %156 : vector<5x32xf32>
    %c0_97 = arith.constant 0 : index
    %c0_98 = arith.constant 0 : index
    %158 = vector.load %arg35[%c0_97, %c0_98] : memref<32x2xf32, #tpu.memory_space<vmem>>, vector<32x2xf32>
    %cst_99 = arith.constant dense<0.000000e+00> : vector<5x2xf32>
    %159 = tpu.matmul %157, %158, %cst_99 {dimension_numbers = #tpu.dot_dimension_numbers<[1], [0], [0], [1], [0, 0, 1, 1], [], []>} : vector<5x32xf32>, vector<32x2xf32>, vector<5x2xf32> -> vector<5x2xf32>
    %c0_100 = arith.constant 0 : index
    %c0_101 = arith.constant 0 : index
    %160 = vector.load %arg36[%c0_100, %c0_101] : memref<1x2xf32, #tpu.memory_space<vmem>>, vector<1x2xf32>
    %161 = vector.broadcast %160 : vector<1x2xf32> to vector<5x2xf32>
    %162 = arith.addf %159, %161 : vector<5x2xf32>
    %163 = vector.extract_strided_slice %162 {offsets = [0, 0], sizes = [5, 1], strides = [1, 1]} : vector<5x2xf32> to vector<5x1xf32>
    %164 = vector.extract_strided_slice %162 {offsets = [0, 1], sizes = [5, 1], strides = [1, 1]} : vector<5x2xf32> to vector<5x1xf32>
    %cst_102 = arith.constant 0.000000e+00 : f32
    %165 = vector.broadcast %cst_102 : f32 to vector<5x1xf32>
    %166 = arith.maximumf %164, %165 : vector<5x1xf32>
    %167 = vector.broadcast %cst_102 : f32 to vector<5x1xf32>
    %168 = arith.subf %164, %167 : vector<5x1xf32>
    %169 = arith.cmpf one, %168, %168 : vector<5x1xf32>
    %170 = vector.broadcast %cst_102 : f32 to vector<5x1xf32>
    %171 = arith.addf %164, %170 : vector<5x1xf32>
    %172 = math.absf %168 : vector<5x1xf32>
    %cst_103 = arith.constant 0.000000e+00 : f32
    %173 = vector.broadcast %cst_103 : f32 to vector<5x1xf32>
    %174 = arith.subf %173, %172 : vector<5x1xf32>
    %175 = math.exp %174 : vector<5x1xf32>
    %176 = math.log1p %175 : vector<5x1xf32>
    %177 = arith.addf %166, %176 : vector<5x1xf32>
    %178 = arith.select %169, %171, %177 : vector<5x1xi1>, vector<5x1xf32>
    %cst_104 = arith.constant 0.899999976 : f32
    %179 = vector.broadcast %cst_104 : f32 to vector<5x1xf32>
    %180 = arith.mulf %179, %178 : vector<5x1xf32>
    %cst_105 = arith.constant 1.000000e-01 : f32
    %181 = vector.broadcast %cst_105 : f32 to vector<5x1xf32>
    %182 = arith.addf %181, %180 : vector<5x1xf32>
    %183 = tpu.iota {dimensions = array<i32: 0>} : vector<5x5xi32>
    %184 = tpu.iota {dimensions = array<i32: 1>} : vector<5x5xi32>
    %185 = arith.cmpi eq, %183, %184 : vector<5x5xi32>
    %186 = arith.extui %185 : vector<5x5xi1> to vector<5x5xi32>
    %187 = arith.sitofp %186 : vector<5x5xi32> to vector<5x5xf32>
    %188 = vector.broadcast %163 : vector<5x1xf32> to vector<5x5xf32>
    %189 = arith.mulf %187, %188 : vector<5x5xf32>
    %cst_106 = arith.constant dense<0.000000e+00> : vector<5xf32>
    %190 = vector.multi_reduction <add>, %189, %cst_106 [0] : vector<5x5xf32> to vector<5xf32>
    %191 = vector.shape_cast %190 : vector<5xf32> to vector<1x5xf32>
    %192 = vector.broadcast %182 : vector<5x1xf32> to vector<5x5xf32>
    %193 = arith.mulf %187, %192 : vector<5x5xf32>
    %cst_107 = arith.constant dense<0.000000e+00> : vector<5xf32>
    %194 = vector.multi_reduction <add>, %193, %cst_107 [0] : vector<5x5xf32> to vector<5xf32>
    %195 = vector.shape_cast %194 : vector<5xf32> to vector<1x5xf32>
    %196 = vector.broadcast %5 : vector<5x1xf32> to vector<5x5xf32>
    %197 = vector.broadcast %191 : vector<1x5xf32> to vector<5x5xf32>
    %198 = arith.subf %196, %197 : vector<5x5xf32>
    %199 = vector.broadcast %195 : vector<1x5xf32> to vector<5x5xf32>
    %200 = arith.divf %198, %199 : vector<5x5xf32>
    %201 = math.log %195 : vector<1x5xf32>
    %cst_108 = arith.constant 0.000000e+00 : f32
    %202 = vector.broadcast %cst_108 : f32 to vector<1x5xf32>
    %203 = arith.subf %202, %201 : vector<1x5xf32>
    %cst_109 = arith.constant 0.918938517 : f32
    %204 = vector.broadcast %cst_109 : f32 to vector<1x5xf32>
    %205 = arith.subf %203, %204 : vector<1x5xf32>
    %cst_110 = arith.constant 5.000000e-01 : f32
    %206 = vector.broadcast %cst_110 : f32 to vector<5x5xf32>
    %207 = arith.mulf %206, %200 : vector<5x5xf32>
    %208 = arith.mulf %207, %200 : vector<5x5xf32>
    %209 = vector.broadcast %205 : vector<1x5xf32> to vector<5x5xf32>
    %210 = arith.subf %209, %208 : vector<5x5xf32>
    %211 = math.exp %87 : vector<1x10xf32>
    %212 = arith.subf %85, %84 : vector<1x10xf32>
    %213 = arith.mulf %212, %212 : vector<1x10xf32>
    %214 = arith.addf %211, %213 : vector<1x10xf32>
    %215 = math.exp %86 : vector<1x10xf32>
    %216 = arith.divf %214, %215 : vector<1x10xf32>
    %cst_111 = arith.constant 1.000000e+00 : f32
    %217 = vector.broadcast %cst_111 : f32 to vector<1x10xf32>
    %218 = arith.subf %216, %217 : vector<1x10xf32>
    %219 = arith.subf %86, %87 : vector<1x10xf32>
    %220 = arith.addf %218, %219 : vector<1x10xf32>
    %221 = vector.shape_cast %220 : vector<1x10xf32> to vector<1x1x10xf32>
    %cst_112 = arith.constant dense<0.000000e+00> : vector<1xf32>
    %222 = vector.multi_reduction <add>, %221, %cst_112 [1, 2] : vector<1x1x10xf32> to vector<1xf32>
    %223 = vector.shape_cast %222 : vector<1xf32> to vector<1x1x1xf32>
    %224 = vector.extract %223[0, 0, 0] : f32 from vector<1x1x1xf32>
    %225 = vector.broadcast %224 : f32 to vector<1x1xf32>
    %226 = vector.shape_cast %210 : vector<5x5xf32> to vector<1x5x5xf32>
    %cst_113 = arith.constant dense<0.000000e+00> : vector<1xf32>
    %227 = vector.multi_reduction <add>, %226, %cst_113 [1, 2] : vector<1x5x5xf32> to vector<1xf32>
    %228 = vector.shape_cast %227 : vector<1xf32> to vector<1x1x1xf32>
    %229 = vector.extract %228[0, 0, 0] : f32 from vector<1x1x1xf32>
    %230 = vector.broadcast %229 : f32 to vector<1x1xf32>
    %cst_114 = arith.constant 4.000000e-02 : f32
    %231 = vector.broadcast %cst_114 : f32 to vector<1x1xf32>
    %232 = arith.mulf %230, %231 : vector<1x1xf32>
    %c0_115 = arith.constant 0 : index
    %c0_116 = arith.constant 0 : index
    %233 = vector.load %arg37[%c0_115, %c0_116] : memref<1x5xf32, #tpu.memory_space<vmem>>, vector<1x5xf32>
    tpu.vector_store %arg37[%c0_115, %c0_116], %191 {strides = array<i32>} : memref<1x5xf32, #tpu.memory_space<vmem>>, vector<1x5xf32>,
    %c0_117 = arith.constant 0 : index
    %c0_118 = arith.constant 0 : index
    %234 = vector.load %arg38[%c0_117, %c0_118] : memref<1x5xf32, #tpu.memory_space<vmem>>, vector<1x5xf32>
    tpu.vector_store %arg38[%c0_117, %c0_118], %195 {strides = array<i32>} : memref<1x5xf32, #tpu.memory_space<vmem>>, vector<1x5xf32>,
    %235 = arith.subf %225, %232 : vector<1x1xf32>
    %c0_119 = arith.constant 0 : index
    %c0_120 = arith.constant 0 : index
    %236 = vector.load %arg39[%c0_119, %c0_120] : memref<1x1xf32, #tpu.memory_space<vmem>>, vector<1x1xf32>
    tpu.vector_store %arg39[%c0_119, %c0_120], %235 {strides = array<i32>} : memref<1x1xf32, #tpu.memory_space<vmem>>, vector<1x1xf32>,
    return
  }
}

</mosaic_0001>

<bundles_post_ra>
// kernel: anp_forward.1
= control target key start
LH: loop header
LB: loop body
LE: loop exit
PB: predicated region body
PF: predicated region fallthrough
CT: control target
= control target key end

     0   :  { %s1792_s6 = smov 1   ;;  %s1793_s10 = smov 2   ;;  %s2262_s0 = inlined_call_operand.smem [shape: u32[40], index: -1, kind: input, shape index: {}] }
   0x1   :  { %s1864_s5 = sld [smem:[%s2262_s0]]   ;;  %s1794_s14 = smov 3  }
   0x2   :  { %s1869_s9 = sld [smem:[%s2262_s0 + %s1792_s6]]   ;;  %s1795_s18 = smov 4  }
   0x3   :  { %s1874_s13 = sld [smem:[%s2262_s0 + %s1793_s10]]   ;;  %s1796_s22 = smov 5  }
   0x4   :  { %s1879_s17 = sld [smem:[%s2262_s0 + %s1794_s14]]   ;;  %s1797_s26 = smov 6  }
   0x5   :  { %s1884_s21 = sld [smem:[%s2262_s0 + %s1795_s18]]   ;;  %s1798_s30 = smov 7  }
   0x6   :  { %s1889_s25 = sld [smem:[%s2262_s0 + %s1796_s22]]   ;;  %s1799_s4 = smov 8  }
   0x7   :  { %2272 = sst [smem:[#allocation39_spill]] %s1864_s5  ;;  %s1800_s10 = smov 9  }
   0x8   :  { %2273 = sst [smem:[#allocation40_spill]] %s1869_s9  ;;  %s1801_s15 = smov 10  }
   0x9   :  { %2274 = sst [smem:[#allocation41_spill]] %s1874_s13  ;;  %s1802_s20 = smov 11  }
   0xa   :  { %2275 = sst [smem:[#allocation42_spill]] %s1879_s17  ;;  %s1804_s1 = smov 13  }
   0xb   :  { %2276 = sst [smem:[#allocation43_spill]] %s1884_s21  ;;  %s1805_s7 = smov 14  }
   0xc   :  { %2277 = sst [smem:[#allocation44_spill]] %s1889_s25  ;;  %s1807_s22 = smov 16  }
   0xd   :  { %s1894_s29 = sld [smem:[%s2262_s0 + %s1797_s26]]   ;;  %s1803_s26 = smov 12  }
   0xe   :  { %s1899_s3 = sld [smem:[%s2262_s0 + %s1798_s30]]   ;;  %s1808_s28 = smov 17  }
   0xf   :  { %s1904_s8 = sld [smem:[%s2262_s0 + %s1799_s4]]  }
  0x10   :  { %s1909_s14 = sld [smem:[%s2262_s0 + %s1800_s10]]  }
  0x11   :  { %s1914_s19 = sld [smem:[%s2262_s0 + %s1801_s15]]   ;;  %s1806_s15 = smov 15  }
  0x12   :  { %s1919_s24 = sld [smem:[%s2262_s0 + %s1802_s20]]  }
  0x13   :  { %2278 = sst [smem:[#allocation45_spill]] %s1894_s29 }
  0x14   :  { %2279 = sst [smem:[#allocation46_spill]] %s1899_s3 }
  0x15   :  { %2280 = sst [smem:[#allocation47_spill]] %s1904_s8 }
  0x16   :  { %2281 = sst [smem:[#allocation48_spill]] %s1909_s14 }
  0x17   :  { %2282 = sst [smem:[#allocation49_spill]] %s1914_s19 }
  0x18   :  { %2283 = sst [smem:[#allocation50_spill]] %s1919_s24 }
  0x19   :  { %s1924_s30 = sld [smem:[%s2262_s0 + %s1803_s26]]  }
  0x1a   :  { %s1929_s6 = sld [smem:[%s2262_s0 + %s1804_s1]]  }
  0x1b   :  { %s1934_s12 = sld [smem:[%s2262_s0 + %s1805_s7]]   ;;  %s1809_s7 = smov 18  }
  0x1c   :  { %s1939_s20 = sld [smem:[%s2262_s0 + %s1806_s15]]   ;;  %s1810_s15 = smov 19  }
  0x1d   :  { %s1944_s27 = sld [smem:[%s2262_s0 + %s1807_s22]]   ;;  %s1811_s22 = smov 20  }
  0x1e   :  { %s1949_s4 = sld [smem:[%s2262_s0 + %s1808_s28]]   ;;  %s1812_s28 = smov 21  }
  0x1f   :  { %2284 = sst [smem:[#allocation51_spill]] %s1924_s30 }
  0x20   :  { %2285 = sst [smem:[#allocation52_spill]] %s1929_s6 }
  0x21   :  { %2286 = sst [smem:[#allocation53_spill]] %s1934_s12 }
  0x22   :  { %2287 = sst [smem:[#allocation54_spill]] %s1939_s20 }
  0x23   :  { %2288 = sst [smem:[#allocation55_spill]] %s1944_s27 }
  0x24   :  { %2289 = sst [smem:[#allocation56_spill]] %s1949_s4 }
  0x25   :  { %s1954_s6 = sld [smem:[%s2262_s0 + %s1809_s7]]   ;;  %s1813_s7 = smov 22  }
  0x26   :  { %s1959_s20 = sld [smem:[%s2262_s0 + %s1810_s15]]   ;;  %s1814_s15 = smov 23  }
  0x27   :  { %s1964_s13 = sld [smem:[%s2262_s0 + %s1811_s22]]   ;;  %s1815_s22 = smov 24  }
  0x28   :  { %s1969_s12 = sld [smem:[%s2262_s0 + %s1812_s28]]   ;;  %s1816_s28 = smov 25  }
  0x29   :  { %s1974_s30 = sld [smem:[%s2262_s0 + %s1813_s7]]   ;;  %s1817_s7 = smov 26  }
  0x2a   :  { %s1979_s24 = sld [smem:[%s2262_s0 + %s1814_s15]]   ;;  %s1818_s15 = smov 27  }
  0x2b   :  { %2290 = sst [smem:[#allocation57_spill]] %s1954_s6 }
  0x2c   :  { %s1984_s14 = sld [smem:[%s2262_s0 + %s1815_s22]]   ;;  %s1819_s22 = smov 28  }
  0x2d   :  { %s1989_s3 = sld [smem:[%s2262_s0 + %s1816_s28]]   ;;  %s1820_s28 = smov 29  }
  0x2e   :  { %s1994_s19 = sld [smem:[%s2262_s0 + %s1817_s7]]   ;;  %s1821_s7 = smov 30  }
  0x2f   :  { %s1999_s6 = sld [smem:[%s2262_s0 + %s1818_s15]]   ;;  %s1822_s15 = smov 31  }
  0x30   :  { %s2004_s27 = sld [smem:[%s2262_s0 + %s1819_s22]]   ;;  %s1823_s22 = smov 32  }
  0x31   :  { %s2009_s4 = sld [smem:[%s2262_s0 + %s1820_s28]]   ;;  %s1824_s28 = smov 33  }
  0x32   :  { %s2014_s25 = sld [smem:[%s2262_s0 + %s1821_s7]]   ;;  %s1825_s7 = smov 34  }
  0x33   :  { %s2019_s21 = sld [smem:[%s2262_s0 + %s1822_s15]]   ;;  %s1826_s15 = smov 35  }
  0x34   :  { %s2024_s17 = sld [smem:[%s2262_s0 + %s1823_s22]]   ;;  %s1827_s22 = smov 36  }
  0x35   :  { %s2029_s8 = sld [smem:[%s2262_s0 + %s1824_s28]]   ;;  %s1828_s28 = smov 37  }
  0x36   :  { %s2034_s29 = sld [smem:[%s2262_s0 + %s1825_s7]]   ;;  %s1829_s7 = smov 38  }
  0x37   :  { %s2039_s9 = sld [smem:[%s2262_s0 + %s1826_s15]]   ;;  %s1830_s15 = smov 39  }
  0x38   :  { %s2044_s5 = sld [smem:[%s2262_s0 + %s1827_s22]]  }
  0x3b   :  { %2291 = sst [smem:[#allocation58_spill]] %s2029_s8 }
  0x3c   :  { %2292 = sst [smem:[#allocation59_spill]] %s2034_s29 }
  0x3d   :  { %2293 = sst [smem:[#allocation60_spill]] %s2039_s9 }
  0x3e   :  { %s2049_s8 = sld [smem:[%s2262_s0 + %s1828_s28]]  }
  0x3f   :  { %s2054_s29 = sld [smem:[%s2262_s0 + %s1829_s7]]  }
  0x40   :  { %s2059_s9 = sld [smem:[%s2262_s0 + %s1830_s15]]  }
  0x41   :  { %85 = vsyncpa [#allocation3], 0 }
  0x42   :  { %86 = vsyncpa [#allocation6], 0 }
  0x43   :  { %87 = vsyncpa [#allocation9], 0 }
  0x44   :  { %88 = vsyncpa [#allocation12], 0 }
  0x45   :  { %89 = vsyncpa [#allocation15], 0 }
  0x46   :  { %90 = vsyncpa [#allocation18], 0 }
  0x47   :  { %91 = vsyncpa [#allocation21], 0 }
  0x48   :  { %92 = vsyncpa [#allocation24], 0 }
  0x49   :  { %93 = vsyncpa [#allocation4], 0  ;;  %s151_s22 = sshll.u32 %s1964_s13, 4  ;;  %s152_s22 = int_to_ptr.hbm [resolvable:$true] %s151_s22 }
  0x4a   :  { %94 = vsyncpa [#allocation27], 0  ;;  %s1831_s23 = smov [#allocation5]   ;;  %s175_s0 = sshll.u32 %s1974_s30, 4  ;;  %s176_s0 = int_to_ptr.hbm [resolvable:$true] %s175_s0 }
  0x4b   :  { %s153_s26 = sshll.u32 %s1831_s23, 4  ;;  %s1364_s28 = sshra.s32 %s152_s22, 4  ;;  %s154_s26 = int_to_ptr.vmem [resolvable:$true] %s153_s26  ;;  %s1365_s28 = int_to_ptr.hbm [resolvable:$true] %s1364_s28 }
  0x4c   :  { %s1366_s1 = scalar_lea.hbm %s1365_s28, 1  ;;  %s1368_s2 = scalar_lea.hbm %s1964_s13, 1 }
  0x4d   :  { %p1367_p0 = scmp.ne.s32.totalorder %s1365_s28, %s1366_s1  ;;  %p1369_p1 = scmp.lt.s32.totalorder %s1365_s28, %s1964_s13 }
  0x4e   :  { %p1370_p2 = scmp.lt.s32.totalorder %s1368_s2, %s1366_s1 }
  0x50   :  { %p1371_p3 = por %p1370_p2, %p1369_p1 }
  0x52   :  { %p1372_p4 = pnand %p1371_p3, %p1367_p0 }
  0x54   :  { %1375 = shalt.err (!%p1372_p4)
}
  0x55   :  { %156 = dma.hbm_to_vmem [thread:$0]  %s152_s22, 16, %s154_s26, [#allocation6]  }
  0x56   :  { %s1832_s7 = smov [#allocation8]   ;;  %s199_s11 = sshll.u32 %s1984_s14, 4  ;;  %s200_s11 = int_to_ptr.hbm [resolvable:$true] %s199_s11 }
  0x57   :  { %s177_s10 = sshll.u32 %s1832_s7, 4  ;;  %s1388_s15 = sshra.s32 %s176_s0, 4  ;;  %s178_s10 = int_to_ptr.vmem [resolvable:$true] %s177_s10  ;;  %s1389_s15 = int_to_ptr.hbm [resolvable:$true] %s1388_s15 }
  0x58   :  { %s1390_s16 = scalar_lea.hbm %s1389_s15, 1  ;;  %s1392_s18 = scalar_lea.hbm %s1974_s30, 1 }
  0x59   :  { %p1391_p5 = scmp.ne.s32.totalorder %s1389_s15, %s1390_s16  ;;  %p1393_p6 = scmp.lt.s32.totalorder %s1389_s15, %s1974_s30 }
  0x5a   :  { %p1394_p7 = scmp.lt.s32.totalorder %s1392_s18, %s1390_s16 }
  0x5c   :  { %p1395_p8 = por %p1394_p7, %p1393_p6 }
  0x5e   :  { %p1396_p9 = pnand %p1395_p8, %p1391_p5 }
  0x60   :  { %1399 = shalt.err (!%p1396_p9)
}
  0x61   :  { %180 = dma.hbm_to_vmem [thread:$0]  %s176_s0, 16, %s178_s10, [#allocation9]  }
  0x62   :  { %s223_s13 = sshll.u32 %s1994_s19, 4  ;;  %s1833_s22 = smov [#allocation11]   ;;  %s224_s13 = int_to_ptr.hbm [resolvable:$true] %s223_s13 }
  0x63   :  { %s201_s23 = sshll.u32 %s1833_s22, 4  ;;  %s1412_s26 = sshra.s32 %s200_s11, 4  ;;  %s202_s23 = int_to_ptr.vmem [resolvable:$true] %s201_s23  ;;  %s1413_s26 = int_to_ptr.hbm [resolvable:$true] %s1412_s26 }
  0x64   :  { %s1414_s28 = scalar_lea.hbm %s1413_s26, 1  ;;  %s1416_s1 = scalar_lea.hbm %s1984_s14, 1 }
  0x65   :  { %p1415_p10 = scmp.ne.s32.totalorder %s1413_s26, %s1414_s28  ;;  %p1417_p11 = scmp.lt.s32.totalorder %s1413_s26, %s1984_s14 }
  0x66   :  { %p1418_p12 = scmp.lt.s32.totalorder %s1416_s1, %s1414_s28 }
  0x68   :  { %p1419_p13 = por %p1418_p12, %p1417_p11 }
  0x6a   :  { %p1420_p0 = pnand %p1419_p13, %p1415_p10 }
  0x6c   :  { %1423 = shalt.err (!%p1420_p0)
}
  0x6d   :  { %204 = dma.hbm_to_vmem [thread:$0]  %s200_s11, 16, %s202_s23, [#allocation12]  }
  0x6e   :  { %s1834_s30 = smov [#allocation14]   ;;  %s247_s2 = sshll.u32 %s2004_s27, 4  ;;  %s248_s2 = int_to_ptr.hbm [resolvable:$true] %s247_s2 }
  0x6f   :  { %s225_s0 = sshll.u32 %s1834_s30, 4  ;;  %s1436_s7 = sshra.s32 %s224_s13, 4  ;;  %s226_s0 = int_to_ptr.vmem [resolvable:$true] %s225_s0  ;;  %s1437_s7 = int_to_ptr.hbm [resolvable:$true] %s1436_s7 }
  0x70   :  { %s1438_s10 = scalar_lea.hbm %s1437_s7, 1  ;;  %s1440_s15 = scalar_lea.hbm %s1994_s19, 1 }
  0x71   :  { %p1439_p1 = scmp.ne.s32.totalorder %s1437_s7, %s1438_s10  ;;  %p1441_p2 = scmp.lt.s32.totalorder %s1437_s7, %s1994_s19 }
  0x72   :  { %p1442_p3 = scmp.lt.s32.totalorder %s1440_s15, %s1438_s10 }
  0x74   :  { %p1443_p4 = por %p1442_p3, %p1441_p2 }
  0x76   :  { %p1444_p5 = pnand %p1443_p4, %p1439_p1 }
  0x78   :  { %1447 = shalt.err (!%p1444_p5)
}
  0x79   :  { %228 = dma.hbm_to_vmem [thread:$0]  %s224_s13, 16, %s226_s0, [#allocation15]  }
  0x7a   :  { %s1835_s14 = smov [#allocation17]   ;;  %s270_s16 = sshll.u32 %s2014_s25, 4  ;;  %s271_s16 = int_to_ptr.hbm [resolvable:$true] %s270_s16 }
  0x7b   :  { %s249_s11 = sshll.u32 %s1835_s14, 4  ;;  %s1460_s18 = sshra.s32 %s248_s2, 4  ;;  %s250_s11 = int_to_ptr.vmem [resolvable:$true] %s249_s11  ;;  %s1461_s18 = int_to_ptr.hbm [resolvable:$true] %s1460_s18 }
  0x7c   :  { %s1462_s22 = scalar_lea.hbm %s1461_s18, 1  ;;  %s1464_s23 = scalar_lea.hbm %s2004_s27, 1 }
  0x7d   :  { %p1463_p6 = scmp.ne.s32.totalorder %s1461_s18, %s1462_s22  ;;  %p1465_p7 = scmp.lt.s32.totalorder %s1461_s18, %s2004_s27 }
  0x7e   :  { %p1466_p8 = scmp.lt.s32.totalorder %s1464_s23, %s1462_s22 }
  0x80   :  { %p1467_p9 = por %p1466_p8, %p1465_p7 }
  0x82   :  { %p1468_p10 = pnand %p1467_p9, %p1463_p6 }
  0x84   :  { %1471 = shalt.err (!%p1468_p10)
}
  0x85   :  { %252 = dma.hbm_to_vmem [thread:$0]  %s248_s2, 16, %s250_s11, [#allocation18]  }
  0x86   :  { %s1836_s19 = smov [#allocation20]   ;;  %s137_s26 = sshll.u32 %s1959_s20, 4  ;;  %s2078_s26 = int_to_ptr.hbm [resolvable:$true] %s137_s26 }
  0x87   :  { %s272_s13 = sshll.u32 %s1836_s19, 4  ;;  %s1484_s28 = sshra.s32 %s271_s16, 4  ;;  %s273_s13 = int_to_ptr.vmem [resolvable:$true] %s272_s13  ;;  %s1485_s28 = int_to_ptr.hbm [resolvable:$true] %s1484_s28 }
  0x88   :  { %s1486_s1 = scalar_lea.hbm %s1485_s28, 16  ;;  %s1488_s27 = scalar_lea.hbm %s2014_s25, 16 }
  0x89   :  { %p1487_p11 = scmp.ne.s32.totalorder %s1485_s28, %s1486_s1  ;;  %p1489_p12 = scmp.lt.s32.totalorder %s1485_s28, %s2014_s25 }
  0x8a   :  { %p1490_p13 = scmp.lt.s32.totalorder %s1488_s27, %s1486_s1 }
  0x8c   :  { %p1491_p0 = por %p1490_p13, %p1489_p12 }
  0x8e   :  { %p1492_p1 = pnand %p1491_p0, %p1487_p11 }
  0x90   :  { %1495 = shalt.err (!%p1492_p1)
}
  0x91   :  { %s1837_s30 = smov 128   ;;  %s1838_s0 = smov 8  }
  0x92   :  { %278 = dma.hbm_to_vmem [thread:$0]  %s271_s16, 256, %s273_s13, [#allocation21], %s1837_s30, %s1837_s30, %s1838_s0  }
  0x93   :  { %s161_s2 = sshll.u32 %s1969_s12, 4  ;;  %s1839_s7 = smov [#allocation2]   ;;  %s2086_s2 = int_to_ptr.hbm [resolvable:$true] %s161_s2 }
  0x94   :  { %s139_s10 = sshll.u32 %s1839_s7, 4  ;;  %s1508_s25 = sshra.s32 %s2078_s26, 4  ;;  %s140_s10 = int_to_ptr.vmem [resolvable:$true] %s139_s10  ;;  %s1509_s25 = int_to_ptr.hbm [resolvable:$true] %s1508_s25 }
  0x95   :  { %s1510_s15 = scalar_lea.hbm %s1509_s25, 32  ;;  %s1512_s14 = scalar_lea.hbm %s1959_s20, 32 }
  0x96   :  { %p1511_p2 = scmp.ne.s32.totalorder %s1509_s25, %s1510_s15  ;;  %p1513_p3 = scmp.lt.s32.totalorder %s1509_s25, %s1959_s20 }
  0x97   :  { %p1514_p4 = scmp.lt.s32.totalorder %s1512_s14, %s1510_s15 }
  0x99   :  { %p1515_p5 = por %p1514_p4, %p1513_p3 }
  0x9b   :  { %p1516_p6 = pnand %p1515_p5, %p1511_p2 }
  0x9d   :  { %1519 = shalt.err (!%p1516_p6)
}
  0x9e   :  { %145 = dma.hbm_to_vmem [thread:$0]  %s2078_s26, 512, %s140_s10, [#allocation3], %s1837_s30, %s1837_s30, %s1838_s0  }
  0x9f   :  { %s1840_s11 = smov [#allocation7]   ;;  %s185_s18 = sshll.u32 %s1979_s24, 4  ;;  %s2096_s18 = int_to_ptr.hbm [resolvable:$true] %s185_s18 }
  0xa0   :  { %s163_s16 = sshll.u32 %s1840_s11, 4  ;;  %s1532_s20 = sshra.s32 %s2086_s2, 4  ;;  %s164_s16 = int_to_ptr.vmem [resolvable:$true] %s163_s16  ;;  %s1533_s20 = int_to_ptr.hbm [resolvable:$true] %s1532_s20 }
  0xa1   :  { %s1534_s22 = scalar_lea.hbm %s1533_s20, 32  ;;  %s1536_s23 = scalar_lea.hbm %s1969_s12, 32 }
  0xa2   :  { %p1535_p7 = scmp.ne.s32.totalorder %s1533_s20, %s1534_s22  ;;  %p1537_p8 = scmp.lt.s32.totalorder %s1533_s20, %s1969_s12 }
  0xa3   :  { %p1538_p9 = scmp.lt.s32.totalorder %s1536_s23, %s1534_s22 }
  0xa5   :  { %p1539_p10 = por %p1538_p9, %p1537_p8 }
  0xa7   :  { %p1540_p11 = pnand %p1539_p10, %p1535_p7 }
  0xa9   :  { %1543 = shalt.err (!%p1540_p11)
}
  0xaa   :  { %169 = dma.hbm_to_vmem [thread:$0]  %s2086_s2, 512, %s164_s16, [#allocation6], %s1837_s30, %s1837_s30, %s1838_s0  }
  0xab   :  { %s209_s19 = sshll.u32 %s1989_s3, 4  ;;  %s1841_s13 = smov [#allocation10]   ;;  %s2106_s19 = int_to_ptr.hbm [resolvable:$true] %s209_s19 }
  0xac   :  { %s187_s26 = sshll.u32 %s1841_s13, 4  ;;  %s1556_s12 = sshra.s32 %s2096_s18, 4  ;;  %s188_s26 = int_to_ptr.vmem [resolvable:$true] %s187_s26  ;;  %s1557_s12 = int_to_ptr.hbm [resolvable:$true] %s1556_s12 }
  0xad   :  { %s1558_s28 = scalar_lea.hbm %s1557_s12, 32  ;;  %s1560_s1 = scalar_lea.hbm %s1979_s24, 32 }
  0xae   :  { %p1559_p12 = scmp.ne.s32.totalorder %s1557_s12, %s1558_s28  ;;  %p1561_p13 = scmp.lt.s32.totalorder %s1557_s12, %s1979_s24 }
  0xaf   :  { %p1562_p0 = scmp.lt.s32.totalorder %s1560_s1, %s1558_s28 }
  0xb1   :  { %p1563_p1 = por %p1562_p0, %p1561_p13 }
  0xb3   :  { %p1564_p2 = pnand %p1563_p1, %p1559_p12 }
  0xb5   :  { %1567 = shalt.err (!%p1564_p2)
}
  0xb6   :  { %193 = dma.hbm_to_vmem [thread:$0]  %s2096_s18, 512, %s188_s26, [#allocation9], %s1837_s30, %s1837_s30, %s1838_s0  }
  0xb7   :  { %s1842_s27 = smov [#allocation13]   ;;  %s233_s7 = sshll.u32 %s1999_s6, 4  ;;  %s2116_s7 = int_to_ptr.hbm [resolvable:$true] %s233_s7 }
  0xb8   :  { %s211_s2 = sshll.u32 %s1842_s27, 4  ;;  %s1580_s24 = sshra.s32 %s2106_s19, 4  ;;  %s212_s2 = int_to_ptr.vmem [resolvable:$true] %s211_s2  ;;  %s1581_s24 = int_to_ptr.hbm [resolvable:$true] %s1580_s24 }
  0xb9   :  { %s1582_s10 = scalar_lea.hbm %s1581_s24, 32  ;;  %s1584_s25 = scalar_lea.hbm %s1989_s3, 32 }
  0xba   :  { %p1583_p3 = scmp.ne.s32.totalorder %s1581_s24, %s1582_s10  ;;  %p1585_p4 = scmp.lt.s32.totalorder %s1581_s24, %s1989_s3 }
  0xbb   :  { %p1586_p5 = scmp.lt.s32.totalorder %s1584_s25, %s1582_s10 }
  0xbd   :  { %p1587_p6 = por %p1586_p5, %p1585_p4 }
  0xbf   :  { %p1588_p7 = pnand %p1587_p6, %p1583_p3 }
  0xc1   :  { %1591 = shalt.err (!%p1588_p7)
}
  0xc2   :  { %217 = dma.hbm_to_vmem [thread:$0]  %s2106_s19, 512, %s212_s2, [#allocation12], %s1837_s30, %s1837_s30, %s1838_s0  }
  0xc3   :  { %s257_s15 = sshll.u32 %s2009_s4, 4  ;;  %s1843_s14 = smov [#allocation16]   ;;  %s2126_s15 = int_to_ptr.hbm [resolvable:$true] %s257_s15 }
  0xc4   :  { %s235_s11 = sshll.u32 %s1843_s14, 4  ;;  %s1604_s3 = sshra.s32 %s2116_s7, 4  ;;  %s236_s11 = int_to_ptr.vmem [resolvable:$true] %s235_s11  ;;  %s1605_s3 = int_to_ptr.hbm [resolvable:$true] %s1604_s3 }
  0xc5   :  { %s1606_s16 = scalar_lea.hbm %s1605_s3, 32  ;;  %s1608_s18 = scalar_lea.hbm %s1999_s6, 32 }
  0xc6   :  { %p1607_p8 = scmp.ne.s32.totalorder %s1605_s3, %s1606_s16  ;;  %p1609_p9 = scmp.lt.s32.totalorder %s1605_s3, %s1999_s6 }
  0xc7   :  { %p1610_p10 = scmp.lt.s32.totalorder %s1608_s18, %s1606_s16 }
  0xc9   :  { %p1611_p11 = por %p1610_p10, %p1609_p9 }
  0xcb   :  { %p1612_p12 = pnand %p1611_p11, %p1607_p8 }
  0xcd   :  { %1615 = shalt.err (!%p1612_p12)
}
  0xce   :  { %241 = dma.hbm_to_vmem [thread:$0]  %s2116_s7, 512, %s236_s11, [#allocation15], %s1837_s30, %s1837_s30, %s1838_s0  }
  0xcf   :  { %s1844_s20 = smov [#allocation19]   ;;  %s284_s23 = sshll.u32 %s2019_s21, 4  ;;  %s285_s23 = int_to_ptr.hbm [resolvable:$true] %s284_s23 }
  0xd0   :  { %s259_s22 = sshll.u32 %s1844_s20, 4  ;;  %s1628_s19 = sshra.s32 %s2126_s15, 4  ;;  %s260_s22 = int_to_ptr.vmem [resolvable:$true] %s259_s22  ;;  %s1629_s19 = int_to_ptr.hbm [resolvable:$true] %s1628_s19 }
  0xd1   :  { %s1630_s6 = scalar_lea.hbm %s1629_s19, 32  ;;  %s1632_s13 = scalar_lea.hbm %s2009_s4, 32 }
  0xd2   :  { %p1631_p13 = scmp.ne.s32.totalorder %s1629_s19, %s1630_s6  ;;  %p1633_p0 = scmp.lt.s32.totalorder %s1629_s19, %s2009_s4 }
  0xd3   :  { %p1634_p1 = scmp.lt.s32.totalorder %s1632_s13, %s1630_s6 }
  0xd5   :  { %p1635_p2 = por %p1634_p1, %p1633_p0 }
  0xd7   :  { %p1636_p3 = pnand %p1635_p2, %p1631_p13 }
  0xd9   :  { %1639 = shalt.err (!%p1636_p3)
}
  0xda   :  { %265 = dma.hbm_to_vmem [thread:$0]  %s2126_s15, 512, %s260_s22, [#allocation18], %s1837_s30, %s1837_s30, %s1838_s0  }
  0xdb   :  { %s295_s26 = sshll.u32 %s2024_s17, 4  ;;  %s1845_s12 = smov [#allocation22]   ;;  %s296_s26 = int_to_ptr.hbm [resolvable:$true] %s295_s26 }
  0xdc   :  { %s286_s28 = sshll.u32 %s1845_s12, 4  ;;  %s1652_s1 = sshra.s32 %s285_s23, 4  ;;  %s287_s28 = int_to_ptr.vmem [resolvable:$true] %s286_s28  ;;  %s1653_s1 = int_to_ptr.hbm [resolvable:$true] %s1652_s1 }
  0xdd   :  { %s1654_s4 = scalar_lea.hbm %s1653_s1, 1  ;;  %s1656_s27 = scalar_lea.hbm %s2019_s21, 1 }
  0xde   :  { %p1655_p4 = scmp.ne.s32.totalorder %s1653_s1, %s1654_s4  ;;  %p1657_p5 = scmp.lt.s32.totalorder %s1653_s1, %s2019_s21 }
  0xdf   :  { %p1658_p6 = scmp.lt.s32.totalorder %s1656_s27, %s1654_s4 }
  0xe1   :  { %p1659_p7 = por %p1658_p6, %p1657_p5 }
  0xe3   :  { %p1660_p8 = pnand %p1659_p7, %p1655_p4 }
  0xe5   :  { %1663 = shalt.err (!%p1660_p8)
}
  0xe6   :  { %289 = dma.hbm_to_vmem [thread:$0]  %s285_s23, 16, %s287_s28, [#allocation21]  }
  0xe7   :  { %s1846_s2 = smov [#allocation23]   ;;  %s1676_s0 = sshra.s32 %s296_s26, 4  ;;  %s1677_s0 = int_to_ptr.hbm [resolvable:$true] %s1676_s0 }
  0xe8   :  { %s297_s30 = sshll.u32 %s1846_s2, 4  ;;  %s1678_s7 = scalar_lea.hbm %s1677_s0, 1  ;;  %s298_s30 = int_to_ptr.vmem [resolvable:$true] %s297_s30 }
  0xe9   :  { %p1679_p9 = scmp.ne.s32.totalorder %s1677_s0, %s1678_s7  ;;  %s1680_s24 = scalar_lea.hbm %s2024_s17, 1 }
  0xea   :  { %p1681_p10 = scmp.lt.s32.totalorder %s1677_s0, %s2024_s17  ;;  %p1682_p11 = scmp.lt.s32.totalorder %s1680_s24, %s1678_s7 }
  0xec   :  { %p1683_p12 = por %p1682_p11, %p1681_p10 }
  0xee   :  { %p1684_p13 = pnand %p1683_p12, %p1679_p9 }
  0xf0   :  { %1687 = shalt.err (!%p1684_p13)
}
  0xf1   :  { %300 = dma.hbm_to_vmem [thread:$0]  %s296_s26, 16, %s298_s30, [#allocation24]  }
  0xf2   :  { %1772 = dma.done.wait [#allocation3], 512  }
  0xf3   :  { %1773 = vsyncadd [#allocation3], 4294966784 }
  0xf4   :  { %1774 = dma.done.wait [#allocation6], 528  }
  0xf5   :  { %1775 = vsyncadd [#allocation6], 4294966768 }
  0xf6   :  { %1776 = dma.done.wait [#allocation9], 528  }
  0xf7   :  { %1777 = vsyncadd [#allocation9], 4294966768 }
  0xf8   :  { %1778 = dma.done.wait [#allocation12], 528  }
  0xf9   :  { %1779 = vsyncadd [#allocation12], 4294966768 }
  0xfa   :  { %1780 = dma.done.wait [#allocation15], 528  }
  0xfb   :  { %1781 = vsyncadd [#allocation15], 4294966768 }
  0xfc   :  { %1782 = dma.done.wait [#allocation18], 528  }
  0xfd   :  { %1783 = vsyncadd [#allocation18], 4294966768 }
  0xfe   :  { %1784 = dma.done.wait [#allocation21], 272  }
  0xff   :  { %1785 = vsyncadd [#allocation21], 4294967024 }
 0x100   :  { %1786 = dma.done.wait [#allocation24], 16  }
 0x101   :  { %1787 = vsyncadd [#allocation24], 4294967280  ;;  %s2294_s17 = sld [smem:[#allocation39_spill]]  ;;  %v1847_v0 = vmov 0   ;;  %v673_v9 = vld [vmem:[#allocation2 + $0x18] sm:$0xff]  ;;  %v672_v10 = vld [vmem:[#allocation2 + $0x10] sm:$0xff] }
 0x102   :  { %s2295_s21 = sld [smem:[#allocation40_spill]]  ;;  %1324 = vset.pattern.permute.xlu1 %v1847_v0  ;;  %1323 = vset.pattern.permute.xlu0 %v1847_v0  ;;  %v671_v11 = vld [vmem:[#allocation2 + $0x8] sm:$0xff]  ;;  %v1329_v12 = vld [vmem:[#allocation22] ss:$0 sm:$0xff]  ;;  %v670_v13 = vld [vmem:[#allocation2] sm:$0xff]  ;;  %vm903_vm0 = vcmask 1042432  }
 0x103   :  { %s2296_s10 = sld [smem:[#allocation45_spill]]  ;;  %1326 = vset.pattern.permute.xlu2 %v1847_v0  ;;  %vm419_vm1 = vcmask 261120   ;;  %v705_v48 = vld [vmem:[#allocation7 + $0x18] sm:$0xff]  ;;  %v704_v49 = vld [vmem:[#allocation7 + $0x10] sm:$0xff]  ;;  %v703_v50 = vld [vmem:[#allocation7 + $0x8] sm:$0xff]  ;;  %vm1848_vm5 = vmmov 1  }
 0x104   :  { %s2297_s25 = sld [smem:[#allocation47_spill]]  ;;  %v702_v51 = vld [vmem:[#allocation7] sm:$0xff]  ;;  %v1336_v60 = vld [vmem:[#allocation5] ss:$0 sm:$0xff]  ;;  %vm542_vm7 = vcmask 1041408   ;;  %vm538_vm8 = vcmask 80896  }
 0x105   :  { %s2298_s15 = sld [smem:[#allocation42_spill]]  ;;  %vm609_vm9 = vcmask 1044480   ;;  %s1850_s28 = smov 10   ;;  %vm605_vm10 = vcmask 171008  }
 0x106   :  { %s2299_s14 = sld [smem:[#allocation43_spill]]  ;;  %s1851_s4 = smov 118  }
 0x107   :  { %v366_v1 = vld [vmem:[%s2294_s17 + $0x8] sm:$0x3]  ;;  %v365_v2 = vld [vmem:[%s2294_s17] sm:$0xff]  ;;  %s2300_s11 = sld [smem:[#allocation44_spill]]  ;;  %s1853_s0 = smov [#allocation26]  }
 0x108   :  { %377 = vperm.xlu1 %1324, %v366_v1   ;;  %372 = vperm.xlu0 %1323, %v365_v2   ;;  %v368_v3 = vld [vmem:[%s2295_s21 + $0x8] sm:$0x3]  ;;  %v367_v4 = vld [vmem:[%s2295_s21] sm:$0xff]  ;;  %s2301_s3 = sld [smem:[#allocation56_spill]]  ;;  %s1152_s7 = sshll.u32 %s1853_s0, 4  ;;  %s1153_s7 = int_to_ptr.vmem [resolvable:$true] %s1152_s7 }
 0x109   :  { %v414_v5 = vld [vmem:[%s2296_s10 + $0x18] sm:$0xff]  ;;  %v413_v6 = vld [vmem:[%s2296_s10 + $0x10] sm:$0xff]  ;;  %v412_v7 = vld [vmem:[%s2296_s10 + $0x8] sm:$0xff]  ;;  %s2302_s16 = sld [smem:[#allocation55_spill]]  ;;  %s1716_s21 = scalar_lea.hbm %s2054_s29, 1 }
 0x10a   :  { %438 = vmatpush.msra.mxu0 %v414_v5  ;;  %v411_v8 = vld [vmem:[%s2296_s10] sm:$0xff]  ;;  %v454_v17 = vld [vmem:[%s2297_s25 + $0x18] sm:$0xff]  ;;  %s2303_s18 = sld [smem:[#allocation57_spill]]  ;;  %v453_v45 = vld [vmem:[%s2297_s25 + $0x10] sm:$0xff] }
 0x10b   :  { %477 = vmatpush.msra.mxu1 %v454_v17  ;;  %v1328_v21 = vld [vmem:[%s2298_s15] ss:$0 sm:$0xff]  ;;  %s2304_s20 = sld [smem:[#allocation49_spill]]  ;;  %v452_v46 = vld [vmem:[%s2297_s25 + $0x8] sm:$0xff] }
 0x10c   :  { %439 = vmatpush.msra.mxu0 %v413_v6  ;;  %v1331_v22 = vld [vmem:[%s2299_s14] ss:$0 sm:$0xff]  ;;  %s2305_s22 = sld [smem:[#allocation46_spill]]  ;;  %v735_v5 = vld [vmem:[#allocation10 + $0x8] sm:$0xff]  ;;  %v734_v6 = vld [vmem:[#allocation10] sm:$0xff] }
 0x10d   :  { %v1334_v28 = vld [vmem:[%s2300_s11] ss:$0 sm:$0xff]  ;;  %478 = vmatpush.msra.mxu1 %v453_v45  ;;  %s2306_s23 = sld [smem:[#allocation48_spill]] }
 0x10e   :  { %440 = vmatpush.msra.mxu0 %v412_v7  ;;  %v1332_v34 = vld [vmem:[%s2301_s3] ss:$0 sm:$0xff]  ;;  %s2307_s19 = sld [smem:[#allocation50_spill]] }
 0x10f   :  { %v1330_v36 = vld [vmem:[%s2302_s16] ss:$0 sm:$0xff]  ;;  %479 = vmatpush.msra.mxu1 %v452_v46  ;;  %s2308_s6 = sld [smem:[#allocation51_spill]] }
 0x110   :  { %393 = vperm.xlu1 %1324, %v368_v3   ;;  %388 = vperm.xlu0 %1323, %v367_v4   ;;  %v1333_v40 = vld [vmem:[%s2303_s18] ss:$0 sm:$0xff]  ;;  %v736_v4 = vld [vmem:[#allocation10 + $0x10] sm:$0xff]  ;;  %s2309_s13 = sld [smem:[#allocation53_spill]] }
 0x111   :  { %441 = vmatpush.msra.mxu0 %v411_v8  ;;  %v451_v47 = vld [vmem:[%s2297_s25] sm:$0xff]  ;;  %v493_v52 = vld [vmem:[%s2304_s20 + $0x18] sm:$0xff]  ;;  %v492_v0 = vld [vmem:[%s2304_s20 + $0x10] sm:$0xff]  ;;  %s2310_s26 = sld [smem:[#allocation41_spill]] }
 0x112   :  { %480 = vmatpush.msra.mxu1 %v451_v47  ;;  %516 = vmatpush.msra.mxu2 %v493_v52  ;;  %v1335_v53 = vld [vmem:[%s2305_s22] ss:$0 sm:$0xff]  ;;  %v491_v1 = vld [vmem:[%s2304_s20 + $0x8] sm:$0xff]  ;;  %s2311_s12 = sld [smem:[#allocation52_spill]] }
 0x113   :  { %693 = vmatpush.msrb.mxu0 %v673_v9  ;;  %v490_v2 = vld [vmem:[%s2304_s20] sm:$0xff]  ;;  %s2312_s1 = sld [smem:[#allocation54_spill]] }
 0x114   :  { %725 = vmatpush.msrb.mxu1 %v705_v48  ;;  %517 = vmatpush.msra.mxu2 %v492_v0  ;;  %v737_v3 = vld [vmem:[#allocation10 + $0x18] sm:$0xff]  ;;  %s2313_s27 = sld [smem:[#allocation58_spill]] }
 0x115   :  { %694 = vmatpush.msrb.mxu0 %v672_v10  ;;  %v1337_v7 = vld [vmem:[%s2306_s23] ss:$0 sm:$0xff]  ;;  %s2314_s2 = sld [smem:[#allocation60_spill]] }
 0x116   :  { %726 = vmatpush.msrb.mxu1 %v704_v49  ;;  %518 = vmatpush.msra.mxu2 %v491_v1  ;;  %v1340_v49 = vld [vmem:[#allocation11] ss:$0 sm:$0xff]  ;;  %s2315_s30 = sld [smem:[#allocation59_spill]] }
 0x117   :  { %695 = vmatpush.msrb.mxu0 %v671_v11  ;;  %v799_v52 = vld [vmem:[#allocation16 + $0x18] sm:$0xff] }
 0x118   :  { %727 = vmatpush.msrb.mxu1 %v703_v50  ;;  %519 = vmatpush.msra.mxu2 %v490_v2  ;;  %v1341_v45 = vld [vmem:[%s2311_s12] ss:$0 sm:$0xff] }
 0x119   :  { %696 = vmatpush.msrb.mxu0 %v670_v13 }
 0x11a   :  { %728 = vmatpush.msrb.mxu1 %v702_v51  ;;  %757 = vmatpush.msrb.mxu2 %v737_v3 }
 0x11c   :  { %758 = vmatpush.msrb.mxu2 %v736_v4 }
 0x11e   :  { %759 = vmatpush.msrb.mxu2 %v735_v5 }
 0x120   :  { %760 = vmatpush.msrb.mxu2 %v734_v6 }
 0x17a   :  { %v378_v14 = vpop.permute.xlu1 %377  ;;  %v373_v15 = vpop.permute.xlu0 %372 }
 0x17b   :  { %v900_v16 = vmul.f32 %v1329_v12, %v378_v14  ;;  %v899_v18 = vmul.f32 %v1329_v12, %v373_v15  ;;  %v383_v26 = vmul.f32 %v1328_v21, %v373_v15  ;;  %v384_v29 = vmul.f32 %v1328_v21, %v378_v14  ;;  %v1338_v14 = vld [vmem:[#allocation8] ss:$0 sm:$0xff] }
 0x17c   :  { %v657_v39 = vmul.f32 %v1330_v36, %v373_v15  ;;  %v600_v36 = vld [vmem:[%s2309_s13 + $0x10] sm:$0x1f] }
 0x17d   :  { %v905_v19 = vrot.slane %v900_v16, 5  ;;  %v904_v20 = vrot.slane %v899_v18, 5  ;;  %v527_v18 = vlaneseq }
 0x17f   :  { %v2160_v23 = vsel %vm903_vm0, %v904_v20, %v905_v19  ;;  %v2191_v19 = vshrl.u32 %v527_v18, 7  ;;  %v2193_v20 = vand.u32 127, %v527_v18 }
 0x181   :  { %vm531_vm2 = vcmp.eq.s32.totalorder %v2191_v19, 0  ;;  %vm532_vm3 = vcmp.lt.s32.totalorder %v2193_v20, 5 }
 0x182   :  { %v2162_v24 = vpop.permute.xlu1 %393  ;;  %v2164_v25 = vpop.permute.xlu0 %388  ;;  %vm533_vm4 = vmxor %vm531_vm2, %vm532_vm3 }
 0x183   :  { %v399_v27 = vmul.f32 %v1331_v22, %v2164_v25  ;;  %v400_v30 = vmul.f32 %v1331_v22, %v2162_v24  ;;  %v662_v37 = vmul.f32 %v1332_v34, %v2164_v25  ;;  %vm534_vm6 = vmxor %vm533_vm4, %vm1848_vm5  ;;  %v1339_v22 = vld [vmem:[%s2307_s19] ss:$0 sm:$0xff]  ;;  %v567_v34 = vld [vmem:[%s2308_s6 + $0x8] sm:$0xff]  ;;  %vm1100_vm4 = vcmask 73728  }
 0x184   :  { %vm998_vm5 = vcmp.eq.s32.totalorder %v2191_v19, %v2193_v20 }
 0x185   :  { %v401_v31 = vadd.f32 %v399_v27, %v383_v26  ;;  %v402_v33 = vadd.f32 %v400_v30, %v384_v29  ;;  %v663_v41 = vadd.f32 %v662_v37, %v657_v39  ;;  %v1849_v26 = vmov 0.0   ;;  %v598_v39 = vld [vmem:[%s2309_s13] sm:$0xff] }
 0x186   :  { %v1236_v27 = vsel %vm534_vm6, 1.0, %v1849_v26  ;;  %vm1007_vm6 = vcmask 36864  }
 0x187   :  { %v407_v32 = vadd.f32 %v1334_v28, %v401_v31  ;;  %v408_v38 = vadd.f32 %v1334_v28, %v402_v33  ;;  %v668_v43 = vadd.f32 %v1333_v40, %v663_v41  ;;  %v537_v30 = vmul.f32 0.2, %v1236_v27  ;;  %v568_v33 = vld [vmem:[%s2308_s6 + $0x10] sm:$0xff]  ;;  %v768_v40 = vld [vmem:[#allocation13 + $0x18] sm:$0xff] }
 0x188   :  { %v767_v41 = vld [vmem:[#allocation13 + $0x10] sm:$0xff] }
 0x189   :  { %v409_v35 = vmax.f32 %v407_v32, 0.0  ;;  %v410_v42 = vmax.f32 %v408_v38, 0.0  ;;  %v669_v44 = vmax.f32 %v668_v43, 0.0  ;;  %v569_v32 = vld [vmem:[%s2308_s6 + $0x18] sm:$0xff]  ;;  %v599_v38 = vld [vmem:[%s2309_s13 + $0x8] sm:$0xff] }
 0x18a   :  { %v765_v43 = vld [vmem:[#allocation13] sm:$0xff] }
 0x18b   :  { %1230 = vmatmul.msk.f32.vlgmr.msra.gmra.mxu0 %vm419_vm1, %v409_v35  ;;  %v566_v35 = vld [vmem:[%s2308_s6] sm:$0xff] }
 0x18c   :  { %819 = vmatpush.msra.mxu0 %v799_v52 }
 0x193   :  { %1231 = vmatmul.msk.f32.gmra.mxu0 %vm419_vm1, %v410_v42  ;;  %v766_v42 = vld [vmem:[#allocation13 + $0x8] sm:$0xff] }
 0x19b   :  { %1242 = vmatmul.msk.f32.vlgmr.msrb.gmra.mxu0 %vm419_vm1, %v669_v44  ;;  %v827_v44 = vld [vmem:[%s2310_s26] sm:$0x1f] }
 0x19c   :  { %830 = vrot.lane.b32.xlu2 %v827_v44, %s1850_s28 }
 0x1f6   :  { %v831_v18 = vpop.permute.xlu2 %830 }
 0x208   :  { %v443_v54 = vpop.f32.mrf.mxu0 }
 0x209   :  { %v444_v55 = vadd.f32 %v1335_v53, %v443_v54  ;;  %v797_v54 = vld [vmem:[#allocation16 + $0x8] sm:$0xff] }
 0x20b   :  { %v449_v56 = vmax.f32 %v444_v55, 0.0  ;;  %v796_v55 = vld [vmem:[#allocation16] sm:$0xff] }
 0x20d   :  { %1232 = vmatmul.msk.f32.vlgmr.msra.gmra.mxu1 %vm419_vm1, %v449_v56  ;;  %v1342_v56 = vld [vmem:[%s2312_s1] ss:$0 sm:$0xff] }
 0x210   :  { %v446_v57 = vpop.f32.mrf.mxu0 }
 0x211   :  { %v447_v58 = vadd.f32 %v1335_v53, %v446_v57  ;;  %v798_v53 = vld [vmem:[#allocation16 + $0x10] sm:$0xff] }
 0x212   :  { %820 = vmatpush.msra.mxu0 %v798_v53 }
 0x213   :  { %v450_v59 = vmax.f32 %v447_v58, 0.0 }
 0x214   :  { %821 = vmatpush.msra.mxu0 %v797_v54 }
 0x215   :  { %1233 = vmatmul.msk.f32.gmra.mxu1 %vm419_vm1, %v450_v59 }
 0x216   :  { %822 = vmatpush.msra.mxu0 %v796_v55 }
 0x218   :  { %v698_v61 = vpop.f32.mrf.mxu0 }
 0x219   :  { %v699_v62 = vadd.f32 %v1336_v60, %v698_v61 }
 0x21b   :  { %v701_v63 = vmax.f32 %v699_v62, 0.0  ;;  %v1343_v62 = vld [vmem:[#allocation14] ss:$0 sm:$0xff] }
 0x21d   :  { %1243 = vmatmul.msk.f32.vlgmr.msrb.gmra.mxu1 %vm419_vm1, %v701_v63 }
 0x28a   :  { %v482_v8 = vpop.f32.mrf.mxu1 }
 0x28b   :  { %v483_v9 = vadd.f32 %v1337_v7, %v482_v8 }
 0x28d   :  { %v488_v10 = vmax.f32 %v483_v9, 0.0 }
 0x28f   :  { %1234 = vmatmul.msk.f32.vlgmr.msra.gmra.mxu2 %vm419_vm1, %v488_v10 }
 0x292   :  { %v485_v11 = vpop.f32.mrf.mxu1 }
 0x293   :  { %v486_v12 = vadd.f32 %v1337_v7, %v485_v11 }
 0x295   :  { %v489_v13 = vmax.f32 %v486_v12, 0.0 }
 0x297   :  { %1235 = vmatmul.msk.f32.gmra.mxu2 %vm419_vm1, %v489_v13 }
 0x29a   :  { %v730_v15 = vpop.f32.mrf.mxu1 }
 0x29b   :  { %v731_v16 = vadd.f32 %v1338_v14, %v730_v15 }
 0x29d   :  { %v733_v17 = vmax.f32 %v731_v16, 0.0 }
 0x29f   :  { %1244 = vmatmul.msk.f32.vlgmr.msrb.gmra.mxu2 %vm419_vm1, %v733_v17 }
 0x312   :  { %v521_v21 = vpop.f32.mrf.mxu2 }
 0x313   :  { %v522_v31 = vadd.f32 %v1339_v22, %v521_v21 }
 0x31a   :  { %v524_v28 = vpop.f32.mrf.mxu2 }
 0x31b   :  { %v525_v29 = vadd.f32 %v1339_v22, %v524_v28 }
 0x31d   :  { %1237 = vmatpush.msk.msra.mxu3 %vm542_vm7, %v525_v29 }
 0x31f   :  { %561 = vmatpush.msra.mxu3 %v522_v31  ;;  %v844_v31 = vld [vmem:[#allocation20] sm:$0xff] }
 0x320   :  { %1238 = vmatmul.msk.f32.vlgmr.msra.gmra.mxu3 %vm538_vm8, %v537_v30  ;;  %v845_v30 = vld [vmem:[#allocation20 + $0x8] sm:$0x3] }
 0x321   :  { %589 = vmatpush.msrb.mxu3 %v569_v32  ;;  %1247 = vmatpush.msk.msra.mxu1 %vm542_vm7, %v845_v30  ;;  %v843_v32 = vld [vmem:[#allocation19 + $0x18] sm:$0xff]  ;;  %vm1130_vm7 = vcmask 32768  }
 0x322   :  { %v762_v50 = vpop.f32.mrf.mxu2  ;;  %887 = vmatpush.msra.mxu2 %v843_v32 }
 0x323   :  { %590 = vmatpush.msrb.mxu3 %v568_v33  ;;  %v763_v51 = vadd.f32 %v1340_v49, %v762_v50  ;;  %867 = vmatpush.msra.mxu1 %v844_v31  ;;  %v842_v33 = vld [vmem:[#allocation19 + $0x10] sm:$0xff] }
 0x324   :  { %888 = vmatpush.msra.mxu2 %v842_v33 }
 0x325   :  { %591 = vmatpush.msrb.mxu3 %v567_v34  ;;  %v841_v34 = vld [vmem:[#allocation19 + $0x8] sm:$0xff] }
 0x326   :  { %889 = vmatpush.msra.mxu2 %v841_v34 }
 0x327   :  { %592 = vmatpush.msrb.mxu3 %v566_v35 }
 0x329   :  { %1240 = vmatpush.msk.msra.mxu3 %vm609_vm9, %v600_v36  ;;  %v840_v36 = vld [vmem:[#allocation19] sm:$0xff] }
 0x32a   :  { %890 = vmatpush.msra.mxu2 %v840_v36 }
 0x32b   :  { %627 = vmatpush.msra.mxu3 %v599_v38 }
 0x32d   :  { %628 = vmatpush.msra.mxu3 %v598_v39 }
 0x3a3   :  { %v563_v37 = vpop.f32.mrf.mxu3 }
 0x3a4   :  { %1239 = vmatmul.msk.f32.vlgmr.msrb.gmra.mxu3 %vm419_vm1, %v563_v37 }
 0x3a5   :  { %788 = vmatpush.msrb.mxu3 %v768_v40 }
 0x3a7   :  { %789 = vmatpush.msrb.mxu3 %v767_v41 }
 0x3a9   :  { %790 = vmatpush.msrb.mxu3 %v766_v42 }
 0x3ab   :  { %791 = vmatpush.msrb.mxu3 %v765_v43 }
 0x427   :  { %v594_v46 = vpop.f32.mrf.mxu3 }
 0x428   :  { %v595_v47 = vadd.f32 %v1341_v45, %v594_v46 }
 0x42a   :  { %v597_v48 = vmax.f32 %v595_v47, 0.0 }
 0x42c   :  { %1241 = vmatmul.msk.f32.vlgmr.msra.gmra.mxu3 %vm605_vm10, %v597_v48 }
 0x434   :  { %1245 = vmatmul.msk.f32.vlgmr.msrb.gmra.mxu3 %vm419_vm1, %v763_v51 }
 0x4af   :  { %v630_v57 = vpop.f32.mrf.mxu3 }
 0x4b0   :  { %v2214_v58 = vadd.f32 %v1342_v56, %v630_v57 }
 0x4b2   :  { %v636_v59 = vand.u32 2147483647, %v2214_v58  ;;  %v1059_v60 = vrot.slane %v2214_v58, 7  ;;  %v633_v12 = vmax.f32 %v2214_v58, 0.0  ;;  %vm634_vm12 = vcmp.ne.f32.partialorder %v2214_v58, %v2214_v58 }
 0x4b3   :  { %v834_v52 = vperm.slane %v2214_v58, 1 }
 0x4b4   :  { %v637_v61 = vsub.f32 0.0, %v636_v59  ;;  %v1061_v63 = vsub.f32 %v2214_v58, %v1059_v60  ;;  %v1344_v59 = vld [vmem:[#allocation17] ss:$0 sm:$0xff] }
 0x4b6   :  { %v638_v0 = vmul.f32 1.442695, %v637_v61  ;;  %v1062_v1 = vmul.f32 %v1061_v63, %v1061_v63  ;;  %v916_v63 = vld [vmem:[%s2313_s27 + $0x8] sm:$0xff] }
 0x4b7   :  { %v793_v2 = vpop.f32.mrf.mxu3 }
 0x4b8   :  { %1348 = vpow2.f32 %v638_v0  ;;  %v794_v3 = vadd.f32 %v1343_v62, %v793_v2  ;;  %1064 = vrot.lane.b32.xlu0 %v1062_v1, %s1850_s28  ;;  %v918_v62 = vld [vmem:[%s2313_s27 + $0x18] sm:$0xff]  ;;  %v915_v0 = vld [vmem:[%s2313_s27] sm:$0xff]  ;;  %v949_v2 = vld [vmem:[%s2314_s2 + $0x10] sm:$0xff] }
 0x4b9   :  { %938 = vmatpush.msra.mxu3 %v918_v62  ;;  %v950_v1 = vld [vmem:[%s2314_s2 + $0x18] sm:$0xff] }
 0x4ba   :  { %1246 = vmatmul.msk.f32.vlgmr.msra.gmra.mxu0 %vm419_vm1, %v794_v3 }
 0x4bb   :  { %970 = vmatpush.msrb.mxu0 %v950_v1 }
 0x4bd   :  { %971 = vmatpush.msrb.mxu0 %v949_v2 }
 0x4be   :  { %v1349_v4 = vpop.eup %1348 }
 0x4bf   :  { %v640_v5 = vadd.f32 1.0, %v1349_v4  ;;  %v643_v6 = vmul.f32 -0.5, %v1349_v4  ;;  %v646_v8 = vand.u32 2147483647, %v1349_v4 }
 0x4c1   :  { %1350 = vlog2.f32 %v640_v5  ;;  %v644_v7 = vadd.f32 1.0, %v643_v6  ;;  %vm647_vm11 = vcmp.lt.f32.partialorder %v646_v8, 0.0004427343  ;;  %v1345_v6 = vld [vmem:[#allocation23] ss:$0 sm:$0xff] }
 0x4c3   :  { %v645_v11 = vmul.f32 %v1349_v4, %v644_v7 }
 0x4c7   :  { %v1351_v9 = vpop.eup %1350 }
 0x4c8   :  { %v642_v10 = vmul.f32 0.6931472, %v1351_v9 }
 0x4ca   :  { %v648_v13 = vsel %vm647_vm11, %v645_v11, %v642_v10  ;;  %v948_v10 = vld [vmem:[%s2314_s2 + $0x8] sm:$0xff]  ;;  %v947_v11 = vld [vmem:[%s2314_s2] sm:$0xff] }
 0x4cb   :  { %v649_v14 = vadd.f32 %v648_v13, %v633_v12  ;;  %972 = vmatpush.msrb.mxu0 %v948_v10  ;;  %v1346_v12 = vld [vmem:[%s2315_s30] ss:$0 sm:$0xff] }
 0x4cd   :  { %v650_v15 = vsel %vm634_vm12, %v2214_v58, %v649_v14  ;;  %v917_v58 = vld [vmem:[%s2313_s27 + $0x10] sm:$0xff]  ;;  %973 = vmatpush.msrb.mxu0 %v947_v11 }
 0x4ce   :  { %v651_v16 = vmul.f32 0.9, %v650_v15  ;;  %939 = vmatpush.msra.mxu3 %v917_v58 }
 0x4d0   :  { %v652_v17 = vadd.f32 0.1, %v651_v16  ;;  %940 = vmatpush.msra.mxu3 %v916_v63  ;;  %v1852_v16 = vmov 1  }
 0x4d1   :  { %1325 = vset.pattern.permute.xlu1 %v1852_v16  ;;  %1327 = vset.pattern.permute.xlu0 %v1852_v16 }
 0x4d2   :  { %v828_v21 = vperm.slane %v652_v17, 1  ;;  %v1056_v27 = vmul.f32 1.442695, %v652_v17  ;;  %v1088_v43 = vrot.slane %v652_v17, 1  ;;  %941 = vmatpush.msra.mxu3 %v915_v0 }
 0x4d4   :  { %v833_v22 = vmul.f32 %v831_v18, %v828_v21  ;;  %1352 = vpow2.f32 %v1056_v27  ;;  %v1090_v48 = vsub.f32 %v652_v17, %v1088_v43  ;;  %v1347_v17 = vld [vmem:[%s2044_s5] ss:$0 sm:$0xff]  ;;  %s1154_s5 = sshll.u32 %s2054_s29, 4  ;;  %s1155_s5 = int_to_ptr.hbm [resolvable:$true] %s1154_s5 }
 0x4d5   :  { %s1712_s24 = sshra.s32 %s1155_s5, 4  ;;  %s1713_s24 = int_to_ptr.hbm [resolvable:$true] %s1712_s24 }
 0x4d6   :  { %836 = vrot.lane.b32.xlu2 %v833_v22, %s1851_s4  ;;  %v1092_v53 = vrot.slane %v1090_v48, 7  ;;  %s1714_s17 = scalar_lea.hbm %s1713_s24, 1  ;;  %p1717_p1 = scmp.lt.s32.totalorder %s1713_s24, %s2054_s29 }
 0x4d7   :  { %p1715_p0 = scmp.ne.s32.totalorder %s1713_s24, %s1714_s17  ;;  %p1718_p2 = scmp.lt.s32.totalorder %s1716_s21, %s1714_s17 }
 0x4d9   :  { %p1719_p3 = por %p1718_p2, %p1717_p1 }
 0x4da   :  { %v1353_v28 = vpop.eup %1352 }
 0x4db   :  { %v1069_v29 = vrot.slane %v1353_v28, 7  ;;  %p1720_p4 = pnand %p1719_p3, %p1715_p0 }
 0x4dd   :  { %1354 = vrcp.f32 %v1069_v29  ;;  %v1082_v41 = vand.u32 2147483648, %v1069_v29  ;;  %vm1076_vm14 = vweird.f32 %v1069_v29  ;;  %v1080_v42 = vand.u32 2147483647, %v1069_v29 }
 0x4df   :  { %v1083_v46 = vor.u32 1.1754944e-38, %v1082_v41  ;;  %vm1081_vm2 = vcmp.eq.f32.partialorder %v1080_v42, 8.507059e+37 }
 0x4e3   :  { %v1355_v35 = vpop.eup %1354 }
 0x4e4   :  { %v1072_v37 = vmul.f32 %v1355_v35, %v1069_v29  ;;  %vm1077_vm13 = vweird.f32 %v1355_v35 }
 0x4e5   :  { %vm1078_vm15 = vmor %vm1076_vm14, %vm1077_vm13 }
 0x4e6   :  { %v1073_v38 = vsub.f32 1.0, %v1072_v37 }
 0x4e8   :  { %v1074_v39 = vmul.f32 %v1355_v35, %v1073_v38 }
 0x4ea   :  { %v1075_v40 = vadd.f32 %v1355_v35, %v1074_v39 }
 0x4ec   :  { %v1079_v44 = vsel %vm1078_vm15, %v1355_v35, %v1075_v40 }
 0x4ed   :  { %v1084_v49 = vsel %vm1081_vm2, %v1083_v46, %v1079_v44  ;;  %v1252_v44 = vsel %vm998_vm5, 1.0, %v1849_v26 }
 0x52a   :  { %v1065_v45 = vpop.permute.xlu0 %1064 }
 0x52b   :  { %v1067_v47 = vadd.f32 %v1353_v28, %v1065_v45 }
 0x52d   :  { %v1085_v50 = vmul.f32 %v1084_v49, %v1067_v47 }
 0x52f   :  { %v1254_v51 = vadd.f32 -1.0, %v1085_v50 }
 0x530   :  { %v837_v54 = vpop.permute.xlu2 %836 }
 0x531   :  { %v839_v55 = vadd.f32 %v837_v54, %v834_v52  ;;  %v1094_v56 = vadd.f32 %v1254_v51, %v1092_v53 }
 0x533   :  { %1248 = vmatmul.msk.f32.vlgmr.msra.gmra.mxu1 %vm538_vm8, %v839_v55  ;;  %v1096_v57 = vrot.slane %v1094_v56, 1 }
 0x535   :  { %1097 = vrot.lane.b32.xlu0 %v1096_v57, %s1851_s4 }
 0x537   :  { %v824_v60 = vpop.f32.mrf.mxu0 }
 0x538   :  { %v825_v61 = vadd.f32 %v1344_v59, %v824_v60 }
 0x53a   :  { %1249 = vmatmul.msk.f32.vlgmr.msra.gmra.mxu2 %vm419_vm1, %v825_v61 }
 0x5a7   :  { %v1098_v42 = vpop.permute.xlu0 %1097 }
 0x5a8   :  { %v1101_v43 = vsel %vm1100_vm4, %v1098_v42, 0.0 }
 0x5b0   :  { %v869_v3 = vpop.f32.mrf.mxu1 }
 0x5bd   :  { %v892_v4 = vpop.f32.mrf.mxu2 }
 0x5be   :  { %v893_v5 = vadd.f32 %v892_v4, %v869_v3 }
 0x5c0   :  { %v908_v7 = vadd.f32 %v2160_v23, %v893_v5 }
 0x5c2   :  { %v913_v8 = vadd.f32 %v1345_v6, %v908_v7 }
 0x5c4   :  { %v914_v9 = vmax.f32 %v913_v8, 0.0 }
 0x5c6   :  { %1250 = vmatmul.msk.f32.vlgmr.msra.gmra.mxu3 %vm419_vm1, %v914_v9 }
 0x649   :  { %v943_v13 = vpop.f32.mrf.mxu3 }
 0x64a   :  { %v944_v14 = vadd.f32 %v1346_v12, %v943_v13 }
 0x64c   :  { %v946_v15 = vmax.f32 %v944_v14, 0.0 }
 0x64e   :  { %1251 = vmatmul.msk.f32.vlgmr.msrb.gmra.mxu0 %vm419_vm1, %v946_v15 }
 0x6cb   :  { %v975_v23 = vpop.f32.mrf.mxu0 }
 0x6cc   :  { %v976_v18 = vadd.f32 %v1347_v17, %v975_v23 }
 0x6ce   :  { %v981_v21 = vand.u32 2147483647, %v976_v18  ;;  %1003 = vperm.xlu2 %1326, %v976_v18   ;;  %v978_v36 = vmax.f32 %v976_v18, 0.0  ;;  %vm979_vm3 = vcmp.ne.f32.partialorder %v976_v18, %v976_v18 }
 0x6d0   :  { %v982_v22 = vsub.f32 0.0, %v981_v21 }
 0x6d2   :  { %v983_v27 = vmul.f32 1.442695, %v982_v22 }
 0x6d4   :  { %1356 = vpow2.f32 %v983_v27 }
 0x6da   :  { %v1357_v28 = vpop.eup %1356 }
 0x6db   :  { %v985_v29 = vadd.f32 1.0, %v1357_v28  ;;  %v988_v30 = vmul.f32 -0.5, %v1357_v28  ;;  %v991_v32 = vand.u32 2147483647, %v1357_v28 }
 0x6dd   :  { %1358 = vlog2.f32 %v985_v29  ;;  %v989_v31 = vadd.f32 1.0, %v988_v30  ;;  %vm992_vm1 = vcmp.lt.f32.partialorder %v991_v32, 0.0004427343 }
 0x6df   :  { %v990_v35 = vmul.f32 %v1357_v28, %v989_v31 }
 0x6e3   :  { %v1359_v33 = vpop.eup %1358 }
 0x6e4   :  { %v987_v34 = vmul.f32 0.6931472, %v1359_v33 }
 0x6e6   :  { %v993_v37 = vsel %vm992_vm1, %v990_v35, %v987_v34 }
 0x6e7   :  { %v994_v38 = vadd.f32 %v993_v37, %v978_v36 }
 0x6e9   :  { %v995_v39 = vsel %vm979_vm3, %v976_v18, %v994_v38 }
 0x6ea   :  { %v996_v40 = vmul.f32 0.9, %v995_v39 }
 0x6ec   :  { %v997_v41 = vadd.f32 0.1, %v996_v40 }
 0x6ee   :  { %1017 = vperm.xlu1 %1325, %v997_v41  }
 0x718   :  { %1102 = vadd.xlane.f32.xlu1 %v1101_v43 }
 0x728   :  { %v1004_v45 = vpop.permute.xlu2 %1003 }
 0x729   :  { %v1006_v46 = vmul.f32 %v1252_v44, %v1004_v45 }
 0x72b   :  { %v1008_v47 = vsel %vm1007_vm6, %v1006_v46, 0.0 }
 0x72c   :  { %v1009_v48 = vrot.slane %v1008_v47, 4 }
 0x72e   :  { %v1010_v49 = vadd.f32 %v1009_v48, %v1008_v47 }
 0x730   :  { %v1011_v50 = vrot.slane %v1010_v49, 2 }
 0x732   :  { %v1012_v51 = vadd.f32 %v1011_v50, %v1010_v49 }
 0x734   :  { %v1013_v52 = vrot.slane %v1012_v51, 1 }
 0x736   :  { %v1014_v53 = vadd.f32 %v1013_v52, %v1012_v51 }
 0x738   :  { %1131 = vst.msk [vmem:[#allocation25] sm:$0x1] %vm1130_vm7, %v1014_v53  ;;  %v1028_v6 = vsub.f32 %v2164_v25, %v1014_v53  ;;  %v1029_v7 = vsub.f32 %v2162_v24, %v1014_v53 }
 0x760   :  { %v1018_v54 = vpop.permute.xlu1 %1017 }
 0x761   :  { %v1020_v55 = vmul.f32 %v1252_v44, %v1018_v54 }
 0x763   :  { %v1021_v56 = vsel %vm1007_vm6, %v1020_v55, 0.0 }
 0x764   :  { %v1022_v19 = vrot.slane %v1021_v56, 4 }
 0x766   :  { %v1023_v20 = vadd.f32 %v1022_v19, %v1021_v56 }
 0x768   :  { %v1024_v26 = vrot.slane %v1023_v20, 2 }
 0x76a   :  { %v1025_v57 = vadd.f32 %v1024_v26, %v1023_v20 }
 0x76c   :  { %v1026_v59 = vrot.slane %v1025_v57, 1 }
 0x76e   :  { %v1027_v60 = vadd.f32 %v1026_v59, %v1025_v57 }
 0x770   :  { %1360 = vrcp.f32 %v1027_v60  ;;  %1132 = vst.msk [vmem:[#allocation26] sm:$0x1] %vm1130_vm7, %v1027_v60  ;;  %v1041_v0 = vand.u32 2147483648, %v1027_v60  ;;  %v1039_v2 = vand.u32 2147483647, %v1027_v60  ;;  %vm1035_vm9 = vweird.f32 %v1027_v60 }
 0x771   :  { %1362 = vlog2.f32 %v1027_v60 }
 0x772   :  { %v1042_v5 = vor.u32 1.1754944e-38, %v1041_v0  ;;  %vm1040_vm11 = vcmp.eq.f32.partialorder %v1039_v2, 8.507059e+37 }
 0x776   :  { %v1361_v61 = vpop.eup %1360 }
 0x777   :  { %v1031_v62 = vmul.f32 %v1361_v61, %v1027_v60  ;;  %v1363_v63 = vpop.eup %1362  ;;  %vm1036_vm8 = vweird.f32 %v1361_v61 }
 0x778   :  { %v1047_v4 = vmul.f32 0.6931472, %v1363_v63  ;;  %vm1037_vm10 = vmor %vm1035_vm9, %vm1036_vm8 }
 0x779   :  { %v1032_v58 = vsub.f32 1.0, %v1031_v62 }
 0x77a   :  { %v1048_v12 = vsub.f32 0.0, %v1047_v4 }
 0x77b   :  { %v1033_v1 = vmul.f32 %v1361_v61, %v1032_v58 }
 0x77c   :  { %v1253_v15 = vadd.f32 -0.9189385, %v1048_v12 }
 0x77d   :  { %v1034_v3 = vadd.f32 %v1361_v61, %v1033_v1 }
 0x77f   :  { %v1038_v8 = vsel %vm1037_vm10, %v1361_v61, %v1034_v3 }
 0x780   :  { %v1043_v9 = vsel %vm1040_vm11, %v1042_v5, %v1038_v8 }
 0x781   :  { %v1044_v10 = vmul.f32 %v1043_v9, %v1028_v6  ;;  %v1045_v11 = vmul.f32 %v1043_v9, %v1029_v7 }
 0x783   :  { %v1050_v13 = vmul.f32 0.5, %v1044_v10  ;;  %v1051_v14 = vmul.f32 0.5, %v1045_v11 }
 0x785   :  { %v1052_v16 = vmul.f32 %v1050_v13, %v1044_v10  ;;  %v1053_v17 = vmul.f32 %v1051_v14, %v1045_v11 }
 0x787   :  { %v1054_v23 = vsub.f32 %v1253_v15, %v1052_v16  ;;  %v1055_v18 = vsub.f32 %v1253_v15, %v1053_v17 }
 0x789   :  { %v1114_v21 = vrot.slane %v1054_v23, 5  ;;  %v1115_v22 = vrot.slane %v1055_v18, 5 }
 0x78b   :  { %v1103_v27 = vpop.xlane.xlu1 %1102  ;;  %v1116_v25 = vsel %vm903_vm0, %v1114_v21, %v1115_v22 }
 0x78c   :  { %v1104_v24 = vrot.slane %v1103_v27, 4  ;;  %v1118_v28 = vsel %vm1007_vm6, %v1116_v25, 0.0 }
 0x78d   :  { %1119 = vadd.xlane.f32.xlu2 %v1118_v28 }
 0x78e   :  { %v1105_v29 = vadd.f32 %v1104_v24, %v1103_v27 }
 0x790   :  { %v1106_v30 = vrot.slane %v1105_v29, 2 }
 0x792   :  { %v1107_v31 = vadd.f32 %v1106_v30, %v1105_v29 }
 0x794   :  { %v1108_v32 = vrot.slane %v1107_v31, 1 }
 0x796   :  { %v1109_v33 = vadd.f32 %v1108_v32, %v1107_v31 }
 0x798   :  { %1255 = vpush %v1109_v33 }
 0x799   :  { %1723 = shalt.err (!%p1720_p4)
}
 0x79a   :  { %1157 = dma.vmem_to_hbm [thread:$0]  %s1153_s7, 16, %s1155_s5, [#allocation27]  }
 0x79b   :  { %s1854_s10 = smov [#allocation25]   ;;  %s1143_s15 = sshll.u32 %s2049_s8, 4  ;;  %s1144_s15 = int_to_ptr.hbm [resolvable:$true] %s1143_s15 }
 0x79c   :  { %s1141_s25 = sshll.u32 %s1854_s10, 4  ;;  %s1736_s14 = sshra.s32 %s1144_s15, 4  ;;  %s1142_s25 = int_to_ptr.vmem [resolvable:$true] %s1141_s25  ;;  %s1737_s14 = int_to_ptr.hbm [resolvable:$true] %s1736_s14 }
 0x79d   :  { %s1738_s11 = scalar_lea.hbm %s1737_s14, 1  ;;  %s1740_s3 = scalar_lea.hbm %s2049_s8, 1 }
 0x79e   :  { %p1739_p5 = scmp.ne.s32.totalorder %s1737_s14, %s1738_s11  ;;  %p1741_p6 = scmp.lt.s32.totalorder %s1737_s14, %s2049_s8 }
 0x79f   :  { %p1742_p7 = scmp.lt.s32.totalorder %s1740_s3, %s1738_s11 }
 0x7a1   :  { %p1743_p8 = por %p1742_p7, %p1741_p6 }
 0x7a3   :  { %p1744_p9 = pnand %p1743_p8, %p1739_p5 }
 0x7a5   :  { %1747 = shalt.err (!%p1744_p9)
}
 0x7a6   :  { %1146 = dma.vmem_to_hbm [thread:$0]  %s1142_s25, 16, %s1144_s15, [#allocation4]   ;;  %vm1134_vm0 = vcmask 0  }
 0x7a7   :  { %s1855_s8 = smov [#allocation28]   ;;  %s1165_s20 = sshll.u32 %s2059_s9, 4  ;;  %s1166_s20 = int_to_ptr.hbm [resolvable:$true] %s1165_s20 }
 0x7a8   :  { %s1163_s18 = sshll.u32 %s1855_s8, 4  ;;  %s1760_s22 = sshra.s32 %s1166_s20, 4  ;;  %s1164_s18 = int_to_ptr.vmem [resolvable:$true] %s1163_s18  ;;  %s1761_s22 = int_to_ptr.hbm [resolvable:$true] %s1760_s22 }
 0x7a9   :  { %s1762_s23 = scalar_lea.hbm %s1761_s22, 1  ;;  %s1764_s19 = scalar_lea.hbm %s2059_s9, 1 }
 0x7aa   :  { %p1763_p10 = scmp.ne.s32.totalorder %s1761_s22, %s1762_s23  ;;  %p1765_p11 = scmp.lt.s32.totalorder %s1761_s22, %s2059_s9 }
 0x7ab   :  { %p1766_p12 = scmp.lt.s32.totalorder %s1764_s19, %s1762_s23 }
 0x7ad   :  { %p1767_p13 = por %p1766_p12, %p1765_p11 }
 0x7af   :  { %p1768_p0 = pnand %p1767_p13, %p1763_p10 }
 0x7c9   :  { %s1256_s29 = spop %1255 }
 0x7ca   :  { %v1111_v43 = vstv %s1256_s29 }
 0x800   :  { %v1120_v34 = vpop.xlane.xlu2 %1119 }
 0x801   :  { %v1121_v35 = vrot.slane %v1120_v34, 4 }
 0x803   :  { %v1122_v36 = vadd.f32 %v1121_v35, %v1120_v34 }
 0x805   :  { %v1123_v37 = vrot.slane %v1122_v36, 2 }
 0x807   :  { %v1124_v38 = vadd.f32 %v1123_v37, %v1122_v36 }
 0x809   :  { %v1125_v39 = vrot.slane %v1124_v38, 1 }
 0x80b   :  { %v1126_v40 = vadd.f32 %v1125_v39, %v1124_v38 }
 0x80d   :  { %1257 = vpush %v1126_v40 }
 0x83e   :  { %s1258_s16 = spop %1257 }
 0x83f   :  { %v1128_v41 = vstv %s1258_s16 }
 0x840   :  { %v1129_v42 = vmul.f32 0.04, %v1128_v41 }
 0x842   :  { %v1133_v44 = vsub.f32 %v1111_v43, %v1129_v42 }
 0x844   :  { %1135 = vst.msk [vmem:[#allocation28] sm:$0x1] %vm1134_vm0, %v1133_v44 }
 0x845   :  { %1771 = shalt.err (!%p1768_p0)
}
 0x846   :  { %1168 = dma.vmem_to_hbm [thread:$0]  %s1164_s18, 16, %s1166_s20, [#allocation27]  }
 0x847   :  { %1788 = dma.done.wait [#allocation4], 16  }
 0x848   :  { %1789 = vsyncadd [#allocation4], 4294967280 }
 0x849   :  { %1790 = dma.done.wait [#allocation27], 32  }
 0x84a   :  { %1791 = vsyncadd [#allocation27], 4294967264 }
 0x84b   :  { %1181 = vsyncpa [#allocation3], 1 }
 0x84c   :  { %1182 = vsyncpa [#allocation6], 1 }
 0x84d   :  { %1183 = vsyncpa [#allocation9], 1 }
 0x84e   :  { %1184 = vsyncpa [#allocation12], 1 }
 0x84f   :  { %1185 = vsyncpa [#allocation15], 1 }
 0x850   :  { %1186 = vsyncpa [#allocation18], 1 }
 0x851   :  { %1187 = vsyncpa [#allocation21], 1 }
 0x852   :  { %1188 = vsyncpa [#allocation24], 1 }
 0x853   :  { %1189 = vsyncpa [#allocation4], 1 }
 0x854   :  { %1190 = vsyncpa [#allocation27], 1 }

</bundles_post_ra>
